<compile_context>
chip_gen: v6e
topology: v6e:2x2x1
jax: 0.10.0
libtpu: 0.0.40
codegen_flags: <defaults>
</compile_context>

<pallas_src>
import functools

import jax
import jax.numpy as jnp
import numpy as np
from jax.experimental import pallas as pl
from jax.experimental.pallas import tpu as pltpu

EPS = 1e-5
KH = KW = 3  # BasicBlock uses 3x3 convs


# ------------------------------ Pallas kernel ------------------------------ #

def _make_block_kernel(stride, OH, OW, Cin, Cout, has_proj):
    """Fused BasicBlock kernel; one grid step == one batch element."""
    s = stride
    M = OH * OW

    def kernel(*refs):
        if has_proj:
            (x_ref, w1_ref, b1_ref, w2_ref, b2_ref,
             wsc_ref, bsc_ref, o_ref, y1p_ref) = refs
        else:
            x_ref, w1_ref, b1_ref, w2_ref, b2_ref, o_ref, y1p_ref = refs

        # ---- conv1 (3x3, stride s, pad 1) + folded-BN1 bias + ReLU ----------
        acc = jnp.zeros((M, Cout), jnp.float32)
        for ki in range(KH):
            for kj in range(KW):
                p = (ki % s) * s + (kj % s)               # stride phase
                slab = x_ref[0, p,
                             ki // s:ki // s + OH,
                             kj // s:kj // s + OW, :]      # (OH, OW, Cin) bf16
                acc += jnp.dot(slab.reshape(M, Cin), w1_ref[ki * KW + kj],
                               preferred_element_type=jnp.float32)
        y1 = jnp.maximum(acc + b1_ref[...], 0.0)

        # Stage y1 (zero-padded by 1) in VMEM scratch; it never touches HBM.
        y1p_ref[...] = jnp.zeros_like(y1p_ref)
        y1p_ref[1:OH + 1, 1:OW + 1, :] = (
            y1.reshape(OH, OW, Cout).astype(y1p_ref.dtype))

        # ---- conv2 (3x3, stride 1, pad 1) + folded-BN2 bias -----------------
        acc = jnp.zeros((M, Cout), jnp.float32)
        for ki in range(KH):
            for kj in range(KW):
                slab = y1p_ref[ki:ki + OH, kj:kj + OW, :]  # (OH, OW, Cout) bf16
                acc += jnp.dot(slab.reshape(M, Cout), w2_ref[ki * KW + kj],
                               preferred_element_type=jnp.float32)
        y2 = acc + b2_ref[...]

        # ---- shortcut: identity, or 1x1 stride-s conv + folded BN -----------
        a = 1 % s                      # phase of padded row/col index 1
        p_sc = a * s + a
        r0 = (1 - a) // s
        xs = x_ref[0, p_sc, r0:r0 + OH, r0:r0 + OW, :]     # (OH, OW, Cin)
        if has_proj:
            sc = jnp.dot(xs.reshape(M, Cin), wsc_ref[...],
                         preferred_element_type=jnp.float32) + bsc_ref[...]
        else:
            sc = xs.reshape(M, Cout).astype(jnp.float32)

        out = jnp.maximum(y2 + sc, 0.0)
        o_ref[...] = out.reshape(1, OH, OW, Cout).astype(o_ref.dtype)

    return kernel


# ------------------------------- JAX wrappers ------------------------------- #

def _split_phases(x_nhwc, stride, pad):
    """Spatially pad and split into stride x stride phases.

    Returns (N, s*s, phH, phW, C) such that conv tap (ki, kj) at stride s is the
    unit-stride slice  phases[:, (ki%s)*s + kj%s, ki//s : ki//s+OH, kj//s : kj//s+OW].
    Total bytes == padded input (no 9x im2col inflation).
    """
    N, H, W, C = x_nhwc.shape
    s = stride
    xp = jnp.pad(x_nhwc, ((0, 0), (pad, pad), (pad, pad), (0, 0)))
    Hp, Wp = H + 2 * pad, W + 2 * pad
    OH = (Hp - KH) // s + 1
    OW = (Wp - KW) // s + 1
    phH = (KH - 1) // s + OH
    phW = (KW - 1) // s + OW
    phases = []
    for a in range(s):
        for b in range(s):
            ph = xp[:, a::s, b::s, :][:, :phH, :phW, :]
            ph = jnp.pad(ph, ((0, 0),
                              (0, phH - ph.shape[1]),
                              (0, phW - ph.shape[2]),
                              (0, 0)))
            phases.append(ph)
    return jnp.stack(phases, axis=1), OH, OW, phH, phW


def basic_block_forward_nhwc(x_nhwc, prep, stride):
    """Fused BasicBlock forward in NHWC. `prep` comes from prepare_block_params."""
    N, H, W, Cin = x_nhwc.shape
    Cout = prep["w1"].shape[-1]
    has_proj = "wsc" in prep

    x = x_nhwc.astype(jnp.bfloat16)
    phases, OH, OW, phH, phW = _split_phases(x, stride, 1)

    kernel = _make_block_kernel(stride, OH, OW, Cin, Cout, has_proj)

    args = [phases, prep["w1"], prep["b1"], prep["w2"], prep["b2"]]
    in_specs = [
        pl.BlockSpec((1, stride * stride, phH, phW, Cin),
                     lambda n: (n, 0, 0, 0, 0)),
        # Constant index_maps -> weights/biases stay resident across the grid.
        pl.BlockSpec((KH * KW, Cin, Cout), lambda n: (0, 0, 0)),
        pl.BlockSpec((1, Cout), lambda n: (0, 0)),
        pl.BlockSpec((KH * KW, Cout, Cout), lambda n: (0, 0, 0)),
        pl.BlockSpec((1, Cout), lambda n: (0, 0)),
    ]
    if has_proj:
        args += [prep["wsc"], prep["bsc"]]
        in_specs += [pl.BlockSpec((Cin, Cout), lambda n: (0, 0)),
                     pl.BlockSpec((1, Cout), lambda n: (0, 0))]

    M = OH * OW
    flops = N * (2 * M * KH * KW * Cin * Cout          # conv1
                 + 2 * M * KH * KW * Cout * Cout       # conv2
                 + (2 * M * Cin * Cout if has_proj else 0))
    bytes_accessed = (int(phases.size) * 2
                      + sum(int(np.prod(a.shape)) * a.dtype.itemsize
                            for a in args[1:])
                      + N * M * Cout * 2)

    out = pl.pallas_call(
        kernel,
        out_shape=jax.ShapeDtypeStruct((N, OH, OW, Cout), jnp.bfloat16),
        grid=(N,),
        in_specs=in_specs,
        out_specs=pl.BlockSpec((1, OH, OW, Cout), lambda n: (n, 0, 0, 0)),
        scratch_shapes=[pltpu.VMEM((OH + 2, OW + 2, Cout), jnp.bfloat16)],
        compiler_params=pltpu.CompilerParams(
            dimension_semantics=("parallel",)),
        cost_estimate=pl.CostEstimate(flops=int(flops), transcendentals=0,
                                      bytes_accessed=int(bytes_accessed)),
    )(*args)
    return out


def basic_block_forward(x_nchw, prep, stride):
    """PyTorch-facing wrapper: NCHW fp32 in / NCHW fp32 out."""
    x = jnp.transpose(x_nchw, (0, 2, 3, 1))           # NCHW -> NHWC
    y = basic_block_forward_nhwc(x, prep, stride)
    return jnp.transpose(y, (0, 3, 1, 2)).astype(jnp.float32)


# ----------------------- one-time parameter preprocessing ------------------- #

def fold_bn(gamma, beta, mean, var, eps=EPS):
    scale = gamma / jnp.sqrt(var + eps)
    return scale, beta - mean * scale


def _w3x3_to_taps(w_oihw, scale):
    """OIHW 3x3 weight -> (9, Cin, Cout) bf16 with BN scale folded in fp32."""
    w = jnp.transpose(w_oihw, (2, 3, 1, 0)).astype(jnp.float32)  # (KH,KW,Cin,Cout)
    w = w * scale[None, None, None, :]
    return w.reshape(KH * KW, w.shape[2], w.shape[3]).astype(jnp.bfloat16)


def prepare_block_params(params, in_channels, out_channels, stride, eps=EPS):
    """Fold BN (inference mode) into weights/biases; matmul-friendly layouts."""
    s1, b1 = fold_bn(params["bn1_g"], params["bn1_b"],
                     params["bn1_m"], params["bn1_v"], eps)
    s2, b2 = fold_bn(params["bn2_g"], params["bn2_b"],
                     params["bn2_m"], params["bn2_v"], eps)
    prep = {
        "w1": _w3x3_to_taps(params["w1"], s1),
        "b1": b1.reshape(1, -1).astype(jnp.float32),
        "w2": _w3x3_to_taps(params["w2"], s2),
        "b2": b2.reshape(1, -1).astype(jnp.float32),
    }
    if stride != 1 or in_channels != out_channels:
        ssc, bsc = fold_bn(params["bnsc_g"], params["bnsc_b"],
                           params["bnsc_m"], params["bnsc_v"], eps)
        wsc = jnp.transpose(params["wsc"], (2, 3, 1, 0)).reshape(
            in_channels, out_channels).astype(jnp.float32)
        prep["wsc"] = (wsc * ssc[None, :]).astype(jnp.bfloat16)
        prep["bsc"] = bsc.reshape(1, -1).astype(jnp.float32)
    return prep


# ---------------------------- pure-JAX reference ---------------------------- #

def ref_forward(x_nchw, params, stride, eps=EPS):
    def conv(x, w, s, pad):
        return jax.lax.conv_general_dilated(
            x, w, (s, s), [(pad, pad), (pad, pad)],
            dimension_numbers=("NCHW", "OIHW", "NCHW"))

    def bn(x, g, b, m, v):
        g, b, m, v = (a[None, :, None, None] for a in (g, b, m, v))
        return (x - m) / jnp.sqrt(v + eps) * g + b

    y = jax.nn.relu(bn(conv(x_nchw, params["w1"], stride, 1),
                       params["bn1_g"], params["bn1_b"],
                       params["bn1_m"], params["bn1_v"]))
    y = bn(conv(y, params["w2"], 1, 1),
           params["bn2_g"], params["bn2_b"], params["bn2_m"], params["bn2_v"])
    Cin = x_nchw.shape[1]
    Cout = params["w1"].shape[0]
    if stride != 1 or Cin != Cout:
        sc = bn(conv(x_nchw, params["wsc"], stride, 0),
                params["bnsc_g"], params["bnsc_b"],
                params["bnsc_m"], params["bnsc_v"])
    else:
        sc = x_nchw
    return jax.nn.relu(y + sc)


# ---------------------------------- main ------------------------------------ #

def make_params(key, in_channels, out_channels):
    ks = jax.random.split(key, 16)
    nrm = lambda k, shp, sd: sd * jax.random.normal(k, shp, jnp.float32)
    params = {
        "w1": nrm(ks[0], (out_channels, in_channels, 3, 3), 0.2),
        "w2": nrm(ks[1], (out_channels, out_channels, 3, 3), 0.2),
        "wsc": nrm(ks[2], (out_channels, in_channels, 1, 1), 0.2),
        "bn1_g": 1.0 + 0.1 * jax.random.normal(ks[3], (out_channels,), jnp.float32),
        "bn1_b": nrm(ks[4], (out_channels,), 0.1),
        "bn1_m": nrm(ks[5], (out_channels,), 0.1),
        "bn1_v": 0.5 + jnp.abs(jax.random.normal(ks[6], (out_channels,), jnp.float32)),
        "bn2_g": 1.0 + 0.1 * jax.random.normal(ks[7], (out_channels,), jnp.float32),
        "bn2_b": nrm(ks[8], (out_channels,), 0.1),
        "bn2_m": nrm(ks[9], (out_channels,), 0.1),
        "bn2_v": 0.5 + jnp.abs(jax.random.normal(ks[10], (out_channels,), jnp.float32)),
        "bnsc_g": 1.0 + 0.1 * jax.random.normal(ks[11], (out_channels,), jnp.float32),
        "bnsc_b": nrm(ks[12], (out_channels,), 0.1),
        "bnsc_m": nrm(ks[13], (out_channels,), 0.1),
        "bnsc_v": 0.5 + jnp.abs(jax.random.normal(ks[14], (out_channels,), jnp.float32)),
    }
    return params, ks[15]


def _run_case(key, in_channels, out_channels, stride, H=16, N=2):
    params, key = make_params(key, in_channels, out_channels)
    x = jax.random.normal(key, (N, in_channels, H, H), jnp.float32)  # NCHW

    prep = prepare_block_params(params, in_channels, out_channels, stride)
    fwd = jax.jit(functools.partial(basic_block_forward, stride=stride))
    out = jax.block_until_ready(fwd(x, prep))

    ref = jax.block_until_ready(ref_forward(x, params, stride))
    # bf16 MXU operands / bf16 output -> looser tolerance than fp32 reference.
    np.testing.assert_allclose(np.asarray(out, dtype=np.float32), np.asarray(ref),
                               atol=5e-2, rtol=5e-2)


if __name__ == "__main__":
    key = jax.random.PRNGKey(0)
    _run_case(key, in_channels=4, out_channels=8, stride=2)  # projection shortcut
    _run_case(key, in_channels=8, out_channels=8, stride=1)  # identity shortcut
    print("KERNEL_OK")
</pallas_src>

<mosaic_0001>
module attributes {stable_mosaic.version = 11 : i64} {
  func.func @kernel(%arg0: i32, %arg1: memref<1x4x9x9x4xbf16, #tpu.memory_space<vmem>>, %arg2: memref<9x4x8xbf16, #tpu.memory_space<vmem>>, %arg3: memref<1x8xf32, #tpu.memory_space<vmem>>, %arg4: memref<9x8x8xbf16, #tpu.memory_space<vmem>>, %arg5: memref<1x8xf32, #tpu.memory_space<vmem>>, %arg6: memref<4x8xbf16, #tpu.memory_space<vmem>>, %arg7: memref<1x8xf32, #tpu.memory_space<vmem>>, %arg8: memref<1x8x8x8xbf16, #tpu.memory_space<vmem>>, %arg9: memref<10x10x8xbf16, #tpu.memory_space<vmem>>) attributes {dimension_semantics = [#tpu.dimension_semantics<parallel>], iteration_bounds = array<i64: 2>, scalar_prefetch = 0 : i64, scratch_operands = 1 : i64, tpu.core_type = #tpu.core_type<tc>, window_params = [{transform_indices = @transform_0, window_bounds = array<i64: 1, 4, 9, 9, 4>}, {pipeline_mode = #tpu.pipeline_mode<synchronous>, transform_indices = @transform_1, window_bounds = array<i64: 9, 4, 8>}, {pipeline_mode = #tpu.pipeline_mode<synchronous>, transform_indices = @transform_2, window_bounds = array<i64: 1, 8>}, {pipeline_mode = #tpu.pipeline_mode<synchronous>, transform_indices = @transform_3, window_bounds = array<i64: 9, 8, 8>}, {pipeline_mode = #tpu.pipeline_mode<synchronous>, transform_indices = @transform_4, window_bounds = array<i64: 1, 8>}, {pipeline_mode = #tpu.pipeline_mode<synchronous>, transform_indices = @transform_5, window_bounds = array<i64: 4, 8>}, {pipeline_mode = #tpu.pipeline_mode<synchronous>, transform_indices = @transform_6, window_bounds = array<i64: 1, 8>}, {transform_indices = @transform_7, window_bounds = array<i64: 1, 8, 8, 8>}]} {
    %cst = arith.constant 0.000000e+00 : f32
    %0 = vector.broadcast %cst : f32 to vector<64x8xf32>
    %c0 = arith.constant 0 : index
    %c0_0 = arith.constant 0 : index
    %c0_1 = arith.constant 0 : index
    %c0_2 = arith.constant 0 : index
    %c0_3 = arith.constant 0 : index
    %1 = vector.load %arg1[%c0, %c0_0, %c0_1, %c0_2, %c0_3] : memref<1x4x9x9x4xbf16, #tpu.memory_space<vmem>>, vector<1x1x8x8x4xbf16>
    %2 = vector.shape_cast %1 : vector<1x1x8x8x4xbf16> to vector<8x8x4xbf16>
    %3 = vector.shape_cast %2 : vector<8x8x4xbf16> to vector<64x4xbf16>
    %c0_4 = arith.constant 0 : index
    %c0_5 = arith.constant 0 : index
    %c0_6 = arith.constant 0 : index
    %4 = vector.load %arg2[%c0_4, %c0_5, %c0_6] : memref<9x4x8xbf16, #tpu.memory_space<vmem>>, vector<1x4x8xbf16>
    %5 = vector.shape_cast %4 : vector<1x4x8xbf16> to vector<4x8xbf16>
    %cst_7 = arith.constant dense<0.000000e+00> : vector<64x8xf32>
    %6 = tpu.matmul %3, %5, %cst_7 {dimension_numbers = #tpu.dot_dimension_numbers<[1], [0], [0], [1], [0, 0, 1, 1], [], []>} : vector<64x4xbf16>, vector<4x8xbf16>, vector<64x8xf32> -> vector<64x8xf32>
    %7 = arith.addf %0, %6 : vector<64x8xf32>
    %c0_8 = arith.constant 0 : index
    %c1 = arith.constant 1 : index
    %c0_9 = arith.constant 0 : index
    %c0_10 = arith.constant 0 : index
    %c0_11 = arith.constant 0 : index
    %8 = vector.load %arg1[%c0_8, %c1, %c0_9, %c0_10, %c0_11] : memref<1x4x9x9x4xbf16, #tpu.memory_space<vmem>>, vector<1x1x8x8x4xbf16>
    %9 = vector.shape_cast %8 : vector<1x1x8x8x4xbf16> to vector<8x8x4xbf16>
    %10 = vector.shape_cast %9 : vector<8x8x4xbf16> to vector<64x4xbf16>
    %c1_12 = arith.constant 1 : index
    %c0_13 = arith.constant 0 : index
    %c0_14 = arith.constant 0 : index
    %11 = vector.load %arg2[%c1_12, %c0_13, %c0_14] : memref<9x4x8xbf16, #tpu.memory_space<vmem>>, vector<1x4x8xbf16>
    %12 = vector.shape_cast %11 : vector<1x4x8xbf16> to vector<4x8xbf16>
    %cst_15 = arith.constant dense<0.000000e+00> : vector<64x8xf32>
    %13 = tpu.matmul %10, %12, %cst_15 {dimension_numbers = #tpu.dot_dimension_numbers<[1], [0], [0], [1], [0, 0, 1, 1], [], []>} : vector<64x4xbf16>, vector<4x8xbf16>, vector<64x8xf32> -> vector<64x8xf32>
    %14 = arith.addf %7, %13 : vector<64x8xf32>
    %c0_16 = arith.constant 0 : index
    %c0_17 = arith.constant 0 : index
    %c0_18 = arith.constant 0 : index
    %c1_19 = arith.constant 1 : index
    %c0_20 = arith.constant 0 : index
    %15 = vector.load %arg1[%c0_16, %c0_17, %c0_18, %c1_19, %c0_20] : memref<1x4x9x9x4xbf16, #tpu.memory_space<vmem>>, vector<1x1x8x8x4xbf16>
    %16 = vector.shape_cast %15 : vector<1x1x8x8x4xbf16> to vector<8x8x4xbf16>
    %17 = vector.shape_cast %16 : vector<8x8x4xbf16> to vector<64x4xbf16>
    %c2 = arith.constant 2 : index
    %c0_21 = arith.constant 0 : index
    %c0_22 = arith.constant 0 : index
    %18 = vector.load %arg2[%c2, %c0_21, %c0_22] : memref<9x4x8xbf16, #tpu.memory_space<vmem>>, vector<1x4x8xbf16>
    %19 = vector.shape_cast %18 : vector<1x4x8xbf16> to vector<4x8xbf16>
    %cst_23 = arith.constant dense<0.000000e+00> : vector<64x8xf32>
    %20 = tpu.matmul %17, %19, %cst_23 {dimension_numbers = #tpu.dot_dimension_numbers<[1], [0], [0], [1], [0, 0, 1, 1], [], []>} : vector<64x4xbf16>, vector<4x8xbf16>, vector<64x8xf32> -> vector<64x8xf32>
    %21 = arith.addf %14, %20 : vector<64x8xf32>
    %c0_24 = arith.constant 0 : index
    %c2_25 = arith.constant 2 : index
    %c0_26 = arith.constant 0 : index
    %c0_27 = arith.constant 0 : index
    %c0_28 = arith.constant 0 : index
    %22 = vector.load %arg1[%c0_24, %c2_25, %c0_26, %c0_27, %c0_28] : memref<1x4x9x9x4xbf16, #tpu.memory_space<vmem>>, vector<1x1x8x8x4xbf16>
    %23 = vector.shape_cast %22 : vector<1x1x8x8x4xbf16> to vector<8x8x4xbf16>
    %24 = vector.shape_cast %23 : vector<8x8x4xbf16> to vector<64x4xbf16>
    %c3 = arith.constant 3 : index
    %c0_29 = arith.constant 0 : index
    %c0_30 = arith.constant 0 : index
    %25 = vector.load %arg2[%c3, %c0_29, %c0_30] : memref<9x4x8xbf16, #tpu.memory_space<vmem>>, vector<1x4x8xbf16>
    %26 = vector.shape_cast %25 : vector<1x4x8xbf16> to vector<4x8xbf16>
    %cst_31 = arith.constant dense<0.000000e+00> : vector<64x8xf32>
    %27 = tpu.matmul %24, %26, %cst_31 {dimension_numbers = #tpu.dot_dimension_numbers<[1], [0], [0], [1], [0, 0, 1, 1], [], []>} : vector<64x4xbf16>, vector<4x8xbf16>, vector<64x8xf32> -> vector<64x8xf32>
    %28 = arith.addf %21, %27 : vector<64x8xf32>
    %c0_32 = arith.constant 0 : index
    %c3_33 = arith.constant 3 : index
    %c0_34 = arith.constant 0 : index
    %c0_35 = arith.constant 0 : index
    %c0_36 = arith.constant 0 : index
    %29 = vector.load %arg1[%c0_32, %c3_33, %c0_34, %c0_35, %c0_36] : memref<1x4x9x9x4xbf16, #tpu.memory_space<vmem>>, vector<1x1x8x8x4xbf16>
    %30 = vector.shape_cast %29 : vector<1x1x8x8x4xbf16> to vector<8x8x4xbf16>
    %31 = vector.shape_cast %30 : vector<8x8x4xbf16> to vector<64x4xbf16>
    %c4 = arith.constant 4 : index
    %c0_37 = arith.constant 0 : index
    %c0_38 = arith.constant 0 : index
    %32 = vector.load %arg2[%c4, %c0_37, %c0_38] : memref<9x4x8xbf16, #tpu.memory_space<vmem>>, vector<1x4x8xbf16>
    %33 = vector.shape_cast %32 : vector<1x4x8xbf16> to vector<4x8xbf16>
    %cst_39 = arith.constant dense<0.000000e+00> : vector<64x8xf32>
    %34 = tpu.matmul %31, %33, %cst_39 {dimension_numbers = #tpu.dot_dimension_numbers<[1], [0], [0], [1], [0, 0, 1, 1], [], []>} : vector<64x4xbf16>, vector<4x8xbf16>, vector<64x8xf32> -> vector<64x8xf32>
    %35 = arith.addf %28, %34 : vector<64x8xf32>
    %c0_40 = arith.constant 0 : index
    %c2_41 = arith.constant 2 : index
    %c0_42 = arith.constant 0 : index
    %c1_43 = arith.constant 1 : index
    %c0_44 = arith.constant 0 : index
    %36 = vector.load %arg1[%c0_40, %c2_41, %c0_42, %c1_43, %c0_44] : memref<1x4x9x9x4xbf16, #tpu.memory_space<vmem>>, vector<1x1x8x8x4xbf16>
    %37 = vector.shape_cast %36 : vector<1x1x8x8x4xbf16> to vector<8x8x4xbf16>
    %38 = vector.shape_cast %37 : vector<8x8x4xbf16> to vector<64x4xbf16>
    %c5 = arith.constant 5 : index
    %c0_45 = arith.constant 0 : index
    %c0_46 = arith.constant 0 : index
    %39 = vector.load %arg2[%c5, %c0_45, %c0_46] : memref<9x4x8xbf16, #tpu.memory_space<vmem>>, vector<1x4x8xbf16>
    %40 = vector.shape_cast %39 : vector<1x4x8xbf16> to vector<4x8xbf16>
    %cst_47 = arith.constant dense<0.000000e+00> : vector<64x8xf32>
    %41 = tpu.matmul %38, %40, %cst_47 {dimension_numbers = #tpu.dot_dimension_numbers<[1], [0], [0], [1], [0, 0, 1, 1], [], []>} : vector<64x4xbf16>, vector<4x8xbf16>, vector<64x8xf32> -> vector<64x8xf32>
    %42 = arith.addf %35, %41 : vector<64x8xf32>
    %c0_48 = arith.constant 0 : index
    %c0_49 = arith.constant 0 : index
    %c1_50 = arith.constant 1 : index
    %c0_51 = arith.constant 0 : index
    %c0_52 = arith.constant 0 : index
    %43 = vector.load %arg1[%c0_48, %c0_49, %c1_50, %c0_51, %c0_52] : memref<1x4x9x9x4xbf16, #tpu.memory_space<vmem>>, vector<1x1x8x8x4xbf16>
    %44 = vector.shape_cast %43 : vector<1x1x8x8x4xbf16> to vector<8x8x4xbf16>
    %45 = vector.shape_cast %44 : vector<8x8x4xbf16> to vector<64x4xbf16>
    %c6 = arith.constant 6 : index
    %c0_53 = arith.constant 0 : index
    %c0_54 = arith.constant 0 : index
    %46 = vector.load %arg2[%c6, %c0_53, %c0_54] : memref<9x4x8xbf16, #tpu.memory_space<vmem>>, vector<1x4x8xbf16>
    %47 = vector.shape_cast %46 : vector<1x4x8xbf16> to vector<4x8xbf16>
    %cst_55 = arith.constant dense<0.000000e+00> : vector<64x8xf32>
    %48 = tpu.matmul %45, %47, %cst_55 {dimension_numbers = #tpu.dot_dimension_numbers<[1], [0], [0], [1], [0, 0, 1, 1], [], []>} : vector<64x4xbf16>, vector<4x8xbf16>, vector<64x8xf32> -> vector<64x8xf32>
    %49 = arith.addf %42, %48 : vector<64x8xf32>
    %c0_56 = arith.constant 0 : index
    %c1_57 = arith.constant 1 : index
    %c1_58 = arith.constant 1 : index
    %c0_59 = arith.constant 0 : index
    %c0_60 = arith.constant 0 : index
    %50 = vector.load %arg1[%c0_56, %c1_57, %c1_58, %c0_59, %c0_60] : memref<1x4x9x9x4xbf16, #tpu.memory_space<vmem>>, vector<1x1x8x8x4xbf16>
    %51 = vector.shape_cast %50 : vector<1x1x8x8x4xbf16> to vector<8x8x4xbf16>
    %52 = vector.shape_cast %51 : vector<8x8x4xbf16> to vector<64x4xbf16>
    %c7 = arith.constant 7 : index
    %c0_61 = arith.constant 0 : index
    %c0_62 = arith.constant 0 : index
    %53 = vector.load %arg2[%c7, %c0_61, %c0_62] : memref<9x4x8xbf16, #tpu.memory_space<vmem>>, vector<1x4x8xbf16>
    %54 = vector.shape_cast %53 : vector<1x4x8xbf16> to vector<4x8xbf16>
    %cst_63 = arith.constant dense<0.000000e+00> : vector<64x8xf32>
    %55 = tpu.matmul %52, %54, %cst_63 {dimension_numbers = #tpu.dot_dimension_numbers<[1], [0], [0], [1], [0, 0, 1, 1], [], []>} : vector<64x4xbf16>, vector<4x8xbf16>, vector<64x8xf32> -> vector<64x8xf32>
    %56 = arith.addf %49, %55 : vector<64x8xf32>
    %c0_64 = arith.constant 0 : index
    %c0_65 = arith.constant 0 : index
    %c1_66 = arith.constant 1 : index
    %c1_67 = arith.constant 1 : index
    %c0_68 = arith.constant 0 : index
    %57 = vector.load %arg1[%c0_64, %c0_65, %c1_66, %c1_67, %c0_68] : memref<1x4x9x9x4xbf16, #tpu.memory_space<vmem>>, vector<1x1x8x8x4xbf16>
    %58 = vector.shape_cast %57 : vector<1x1x8x8x4xbf16> to vector<8x8x4xbf16>
    %59 = vector.shape_cast %58 : vector<8x8x4xbf16> to vector<64x4xbf16>
    %c8 = arith.constant 8 : index
    %c0_69 = arith.constant 0 : index
    %c0_70 = arith.constant 0 : index
    %60 = vector.load %arg2[%c8, %c0_69, %c0_70] : memref<9x4x8xbf16, #tpu.memory_space<vmem>>, vector<1x4x8xbf16>
    %61 = vector.shape_cast %60 : vector<1x4x8xbf16> to vector<4x8xbf16>
    %cst_71 = arith.constant dense<0.000000e+00> : vector<64x8xf32>
    %62 = tpu.matmul %59, %61, %cst_71 {dimension_numbers = #tpu.dot_dimension_numbers<[1], [0], [0], [1], [0, 0, 1, 1], [], []>} : vector<64x4xbf16>, vector<4x8xbf16>, vector<64x8xf32> -> vector<64x8xf32>
    %63 = arith.addf %56, %62 : vector<64x8xf32>
    %c0_72 = arith.constant 0 : index
    %c0_73 = arith.constant 0 : index
    %64 = vector.load %arg3[%c0_72, %c0_73] : memref<1x8xf32, #tpu.memory_space<vmem>>, vector<1x8xf32>
    %65 = vector.broadcast %64 : vector<1x8xf32> to vector<64x8xf32>
    %66 = arith.addf %63, %65 : vector<64x8xf32>
    %cst_74 = arith.constant 0.000000e+00 : f32
    %67 = vector.broadcast %cst_74 : f32 to vector<64x8xf32>
    %68 = arith.maximumf %66, %67 : vector<64x8xf32>
    %cst_75 = arith.constant 0.000000e+00 : bf16
    %69 = vector.broadcast %cst_75 : bf16 to vector<10x10x8xbf16>
    %c0_76 = arith.constant 0 : index
    %c0_77 = arith.constant 0 : index
    %c0_78 = arith.constant 0 : index
    %70 = vector.load %arg9[%c0_76, %c0_77, %c0_78] : memref<10x10x8xbf16, #tpu.memory_space<vmem>>, vector<10x10x8xbf16>
    tpu.vector_store %arg9[%c0_76, %c0_77, %c0_78], %69 {strides = array<i32>} : memref<10x10x8xbf16, #tpu.memory_space<vmem>>, vector<10x10x8xbf16>,
    %71 = vector.shape_cast %68 : vector<64x8xf32> to vector<8x8x8xf32>
    %72 = arith.truncf %71 : vector<8x8x8xf32> to vector<8x8x8xbf16>
    %c1_79 = arith.constant 1 : index
    %c1_80 = arith.constant 1 : index
    %c0_81 = arith.constant 0 : index
    %73 = vector.load %arg9[%c1_79, %c1_80, %c0_81] : memref<10x10x8xbf16, #tpu.memory_space<vmem>>, vector<8x8x8xbf16>
    tpu.vector_store %arg9[%c1_79, %c1_80, %c0_81], %72 {strides = array<i32>} : memref<10x10x8xbf16, #tpu.memory_space<vmem>>, vector<8x8x8xbf16>,
    %cst_82 = arith.constant 0.000000e+00 : f32
    %74 = vector.broadcast %cst_82 : f32 to vector<64x8xf32>
    %c0_83 = arith.constant 0 : index
    %c0_84 = arith.constant 0 : index
    %c0_85 = arith.constant 0 : index
    %75 = vector.load %arg9[%c0_83, %c0_84, %c0_85] : memref<10x10x8xbf16, #tpu.memory_space<vmem>>, vector<8x8x8xbf16>
    %76 = vector.shape_cast %75 : vector<8x8x8xbf16> to vector<64x8xbf16>
    %c0_86 = arith.constant 0 : index
    %c0_87 = arith.constant 0 : index
    %c0_88 = arith.constant 0 : index
    %77 = vector.load %arg4[%c0_86, %c0_87, %c0_88] : memref<9x8x8xbf16, #tpu.memory_space<vmem>>, vector<1x8x8xbf16>
    %78 = vector.shape_cast %77 : vector<1x8x8xbf16> to vector<8x8xbf16>
    %cst_89 = arith.constant dense<0.000000e+00> : vector<64x8xf32>
    %79 = tpu.matmul %76, %78, %cst_89 {dimension_numbers = #tpu.dot_dimension_numbers<[1], [0], [0], [1], [0, 0, 1, 1], [], []>} : vector<64x8xbf16>, vector<8x8xbf16>, vector<64x8xf32> -> vector<64x8xf32>
    %80 = arith.addf %74, %79 : vector<64x8xf32>
    %c0_90 = arith.constant 0 : index
    %c1_91 = arith.constant 1 : index
    %c0_92 = arith.constant 0 : index
    %81 = vector.load %arg9[%c0_90, %c1_91, %c0_92] : memref<10x10x8xbf16, #tpu.memory_space<vmem>>, vector<8x8x8xbf16>
    %82 = vector.shape_cast %81 : vector<8x8x8xbf16> to vector<64x8xbf16>
    %c1_93 = arith.constant 1 : index
    %c0_94 = arith.constant 0 : index
    %c0_95 = arith.constant 0 : index
    %83 = vector.load %arg4[%c1_93, %c0_94, %c0_95] : memref<9x8x8xbf16, #tpu.memory_space<vmem>>, vector<1x8x8xbf16>
    %84 = vector.shape_cast %83 : vector<1x8x8xbf16> to vector<8x8xbf16>
    %cst_96 = arith.constant dense<0.000000e+00> : vector<64x8xf32>
    %85 = tpu.matmul %82, %84, %cst_96 {dimension_numbers = #tpu.dot_dimension_numbers<[1], [0], [0], [1], [0, 0, 1, 1], [], []>} : vector<64x8xbf16>, vector<8x8xbf16>, vector<64x8xf32> -> vector<64x8xf32>
    %86 = arith.addf %80, %85 : vector<64x8xf32>
    %c0_97 = arith.constant 0 : index
    %c2_98 = arith.constant 2 : index
    %c0_99 = arith.constant 0 : index
    %87 = vector.load %arg9[%c0_97, %c2_98, %c0_99] : memref<10x10x8xbf16, #tpu.memory_space<vmem>>, vector<8x8x8xbf16>
    %88 = vector.shape_cast %87 : vector<8x8x8xbf16> to vector<64x8xbf16>
    %c2_100 = arith.constant 2 : index
    %c0_101 = arith.constant 0 : index
    %c0_102 = arith.constant 0 : index
    %89 = vector.load %arg4[%c2_100, %c0_101, %c0_102] : memref<9x8x8xbf16, #tpu.memory_space<vmem>>, vector<1x8x8xbf16>
    %90 = vector.shape_cast %89 : vector<1x8x8xbf16> to vector<8x8xbf16>
    %cst_103 = arith.constant dense<0.000000e+00> : vector<64x8xf32>
    %91 = tpu.matmul %88, %90, %cst_103 {dimension_numbers = #tpu.dot_dimension_numbers<[1], [0], [0], [1], [0, 0, 1, 1], [], []>} : vector<64x8xbf16>, vector<8x8xbf16>, vector<64x8xf32> -> vector<64x8xf32>
    %92 = arith.addf %86, %91 : vector<64x8xf32>
    %c1_104 = arith.constant 1 : index
    %c0_105 = arith.constant 0 : index
    %c0_106 = arith.constant 0 : index
    %93 = vector.load %arg9[%c1_104, %c0_105, %c0_106] : memref<10x10x8xbf16, #tpu.memory_space<vmem>>, vector<8x8x8xbf16>
    %94 = vector.shape_cast %93 : vector<8x8x8xbf16> to vector<64x8xbf16>
    %c3_107 = arith.constant 3 : index
    %c0_108 = arith.constant 0 : index
    %c0_109 = arith.constant 0 : index
    %95 = vector.load %arg4[%c3_107, %c0_108, %c0_109] : memref<9x8x8xbf16, #tpu.memory_space<vmem>>, vector<1x8x8xbf16>
    %96 = vector.shape_cast %95 : vector<1x8x8xbf16> to vector<8x8xbf16>
    %cst_110 = arith.constant dense<0.000000e+00> : vector<64x8xf32>
    %97 = tpu.matmul %94, %96, %cst_110 {dimension_numbers = #tpu.dot_dimension_numbers<[1], [0], [0], [1], [0, 0, 1, 1], [], []>} : vector<64x8xbf16>, vector<8x8xbf16>, vector<64x8xf32> -> vector<64x8xf32>
    %98 = arith.addf %92, %97 : vector<64x8xf32>
    %c1_111 = arith.constant 1 : index
    %c1_112 = arith.constant 1 : index
    %c0_113 = arith.constant 0 : index
    %99 = vector.load %arg9[%c1_111, %c1_112, %c0_113] : memref<10x10x8xbf16, #tpu.memory_space<vmem>>, vector<8x8x8xbf16>
    %100 = vector.shape_cast %99 : vector<8x8x8xbf16> to vector<64x8xbf16>
    %c4_114 = arith.constant 4 : index
    %c0_115 = arith.constant 0 : index
    %c0_116 = arith.constant 0 : index
    %101 = vector.load %arg4[%c4_114, %c0_115, %c0_116] : memref<9x8x8xbf16, #tpu.memory_space<vmem>>, vector<1x8x8xbf16>
    %102 = vector.shape_cast %101 : vector<1x8x8xbf16> to vector<8x8xbf16>
    %cst_117 = arith.constant dense<0.000000e+00> : vector<64x8xf32>
    %103 = tpu.matmul %100, %102, %cst_117 {dimension_numbers = #tpu.dot_dimension_numbers<[1], [0], [0], [1], [0, 0, 1, 1], [], []>} : vector<64x8xbf16>, vector<8x8xbf16>, vector<64x8xf32> -> vector<64x8xf32>
    %104 = arith.addf %98, %103 : vector<64x8xf32>
    %c1_118 = arith.constant 1 : index
    %c2_119 = arith.constant 2 : index
    %c0_120 = arith.constant 0 : index
    %105 = vector.load %arg9[%c1_118, %c2_119, %c0_120] : memref<10x10x8xbf16, #tpu.memory_space<vmem>>, vector<8x8x8xbf16>
    %106 = vector.shape_cast %105 : vector<8x8x8xbf16> to vector<64x8xbf16>
    %c5_121 = arith.constant 5 : index
    %c0_122 = arith.constant 0 : index
    %c0_123 = arith.constant 0 : index
    %107 = vector.load %arg4[%c5_121, %c0_122, %c0_123] : memref<9x8x8xbf16, #tpu.memory_space<vmem>>, vector<1x8x8xbf16>
    %108 = vector.shape_cast %107 : vector<1x8x8xbf16> to vector<8x8xbf16>
    %cst_124 = arith.constant dense<0.000000e+00> : vector<64x8xf32>
    %109 = tpu.matmul %106, %108, %cst_124 {dimension_numbers = #tpu.dot_dimension_numbers<[1], [0], [0], [1], [0, 0, 1, 1], [], []>} : vector<64x8xbf16>, vector<8x8xbf16>, vector<64x8xf32> -> vector<64x8xf32>
    %110 = arith.addf %104, %109 : vector<64x8xf32>
    %c2_125 = arith.constant 2 : index
    %c0_126 = arith.constant 0 : index
    %c0_127 = arith.constant 0 : index
    %111 = vector.load %arg9[%c2_125, %c0_126, %c0_127] : memref<10x10x8xbf16, #tpu.memory_space<vmem>>, vector<8x8x8xbf16>
    %112 = vector.shape_cast %111 : vector<8x8x8xbf16> to vector<64x8xbf16>
    %c6_128 = arith.constant 6 : index
    %c0_129 = arith.constant 0 : index
    %c0_130 = arith.constant 0 : index
    %113 = vector.load %arg4[%c6_128, %c0_129, %c0_130] : memref<9x8x8xbf16, #tpu.memory_space<vmem>>, vector<1x8x8xbf16>
    %114 = vector.shape_cast %113 : vector<1x8x8xbf16> to vector<8x8xbf16>
    %cst_131 = arith.constant dense<0.000000e+00> : vector<64x8xf32>
    %115 = tpu.matmul %112, %114, %cst_131 {dimension_numbers = #tpu.dot_dimension_numbers<[1], [0], [0], [1], [0, 0, 1, 1], [], []>} : vector<64x8xbf16>, vector<8x8xbf16>, vector<64x8xf32> -> vector<64x8xf32>
    %116 = arith.addf %110, %115 : vector<64x8xf32>
    %c2_132 = arith.constant 2 : index
    %c1_133 = arith.constant 1 : index
    %c0_134 = arith.constant 0 : index
    %117 = vector.load %arg9[%c2_132, %c1_133, %c0_134] : memref<10x10x8xbf16, #tpu.memory_space<vmem>>, vector<8x8x8xbf16>
    %118 = vector.shape_cast %117 : vector<8x8x8xbf16> to vector<64x8xbf16>
    %c7_135 = arith.constant 7 : index
    %c0_136 = arith.constant 0 : index
    %c0_137 = arith.constant 0 : index
    %119 = vector.load %arg4[%c7_135, %c0_136, %c0_137] : memref<9x8x8xbf16, #tpu.memory_space<vmem>>, vector<1x8x8xbf16>
    %120 = vector.shape_cast %119 : vector<1x8x8xbf16> to vector<8x8xbf16>
    %cst_138 = arith.constant dense<0.000000e+00> : vector<64x8xf32>
    %121 = tpu.matmul %118, %120, %cst_138 {dimension_numbers = #tpu.dot_dimension_numbers<[1], [0], [0], [1], [0, 0, 1, 1], [], []>} : vector<64x8xbf16>, vector<8x8xbf16>, vector<64x8xf32> -> vector<64x8xf32>
    %122 = arith.addf %116, %121 : vector<64x8xf32>
    %c2_139 = arith.constant 2 : index
    %c2_140 = arith.constant 2 : index
    %c0_141 = arith.constant 0 : index
    %123 = vector.load %arg9[%c2_139, %c2_140, %c0_141] : memref<10x10x8xbf16, #tpu.memory_space<vmem>>, vector<8x8x8xbf16>
    %124 = vector.shape_cast %123 : vector<8x8x8xbf16> to vector<64x8xbf16>
    %c8_142 = arith.constant 8 : index
    %c0_143 = arith.constant 0 : index
    %c0_144 = arith.constant 0 : index
    %125 = vector.load %arg4[%c8_142, %c0_143, %c0_144] : memref<9x8x8xbf16, #tpu.memory_space<vmem>>, vector<1x8x8xbf16>
    %126 = vector.shape_cast %125 : vector<1x8x8xbf16> to vector<8x8xbf16>
    %cst_145 = arith.constant dense<0.000000e+00> : vector<64x8xf32>
    %127 = tpu.matmul %124, %126, %cst_145 {dimension_numbers = #tpu.dot_dimension_numbers<[1], [0], [0], [1], [0, 0, 1, 1], [], []>} : vector<64x8xbf16>, vector<8x8xbf16>, vector<64x8xf32> -> vector<64x8xf32>
    %128 = arith.addf %122, %127 : vector<64x8xf32>
    %c0_146 = arith.constant 0 : index
    %c0_147 = arith.constant 0 : index
    %129 = vector.load %arg5[%c0_146, %c0_147] : memref<1x8xf32, #tpu.memory_space<vmem>>, vector<1x8xf32>
    %130 = vector.broadcast %129 : vector<1x8xf32> to vector<64x8xf32>
    %131 = arith.addf %128, %130 : vector<64x8xf32>
    %c0_148 = arith.constant 0 : index
    %c3_149 = arith.constant 3 : index
    %c0_150 = arith.constant 0 : index
    %c0_151 = arith.constant 0 : index
    %c0_152 = arith.constant 0 : index
    %132 = vector.load %arg1[%c0_148, %c3_149, %c0_150, %c0_151, %c0_152] : memref<1x4x9x9x4xbf16, #tpu.memory_space<vmem>>, vector<1x1x8x8x4xbf16>
    %133 = vector.shape_cast %132 : vector<1x1x8x8x4xbf16> to vector<8x8x4xbf16>
    %134 = vector.shape_cast %133 : vector<8x8x4xbf16> to vector<64x4xbf16>
    %c0_153 = arith.constant 0 : index
    %c0_154 = arith.constant 0 : index
    %135 = vector.load %arg6[%c0_153, %c0_154] : memref<4x8xbf16, #tpu.memory_space<vmem>>, vector<4x8xbf16>
    %cst_155 = arith.constant dense<0.000000e+00> : vector<64x8xf32>
    %136 = tpu.matmul %134, %135, %cst_155 {dimension_numbers = #tpu.dot_dimension_numbers<[1], [0], [0], [1], [0, 0, 1, 1], [], []>} : vector<64x4xbf16>, vector<4x8xbf16>, vector<64x8xf32> -> vector<64x8xf32>
    %c0_156 = arith.constant 0 : index
    %c0_157 = arith.constant 0 : index
    %137 = vector.load %arg7[%c0_156, %c0_157] : memref<1x8xf32, #tpu.memory_space<vmem>>, vector<1x8xf32>
    %138 = vector.broadcast %137 : vector<1x8xf32> to vector<64x8xf32>
    %139 = arith.addf %136, %138 : vector<64x8xf32>
    %140 = arith.addf %131, %139 : vector<64x8xf32>
    %cst_158 = arith.constant 0.000000e+00 : f32
    %141 = vector.broadcast %cst_158 : f32 to vector<64x8xf32>
    %142 = arith.maximumf %140, %141 : vector<64x8xf32>
    %143 = vector.shape_cast %142 : vector<64x8xf32> to vector<1x8x8x8xf32>
    %144 = arith.truncf %143 : vector<1x8x8x8xf32> to vector<1x8x8x8xbf16>
    %c0_159 = arith.constant 0 : index
    %c0_160 = arith.constant 0 : index
    %c0_161 = arith.constant 0 : index
    %c0_162 = arith.constant 0 : index
    %145 = vector.load %arg8[%c0_159, %c0_160, %c0_161, %c0_162] : memref<1x8x8x8xbf16, #tpu.memory_space<vmem>>, vector<1x8x8x8xbf16>
    tpu.vector_store %arg8[%c0_159, %c0_160, %c0_161, %c0_162], %144 {strides = array<i32>} : memref<1x8x8x8xbf16, #tpu.memory_space<vmem>>, vector<1x8x8x8xbf16>,
    return
  }
  func.func @transform_0(%arg0: i32) -> (i32, i32, i32, i32, i32) {
    %c0_i32 = arith.constant 0 : i32
    %c0_i32_0 = arith.constant 0 : i32
    %c0_i32_1 = arith.constant 0 : i32
    %c0_i32_2 = arith.constant 0 : i32
    %c0_i32_3 = arith.constant 0 : i32
    return %arg0, %c0_i32, %c0_i32_0, %c0_i32_1, %c0_i32_2 : i32, i32, i32, i32, i32
  }
  func.func @transform_1(%arg0: i32) -> (i32, i32, i32) {
    %c0_i32 = arith.constant 0 : i32
    %c0_i32_0 = arith.constant 0 : i32
    %c0_i32_1 = arith.constant 0 : i32
    %c0_i32_2 = arith.constant 0 : i32
    return %c0_i32, %c0_i32_0, %c0_i32_1 : i32, i32, i32
  }
  func.func @transform_2(%arg0: i32) -> (i32, i32) {
    %c0_i32 = arith.constant 0 : i32
    %c0_i32_0 = arith.constant 0 : i32
    %c0_i32_1 = arith.constant 0 : i32
    return %c0_i32, %c0_i32_0 : i32, i32
  }
  func.func @transform_3(%arg0: i32) -> (i32, i32, i32) {
    %c0_i32 = arith.constant 0 : i32
    %c0_i32_0 = arith.constant 0 : i32
    %c0_i32_1 = arith.constant 0 : i32
    %c0_i32_2 = arith.constant 0 : i32
    return %c0_i32, %c0_i32_0, %c0_i32_1 : i32, i32, i32
  }
  func.func @transform_4(%arg0: i32) -> (i32, i32) {
    %c0_i32 = arith.constant 0 : i32
    %c0_i32_0 = arith.constant 0 : i32
    %c0_i32_1 = arith.constant 0 : i32
    return %c0_i32, %c0_i32_0 : i32, i32
  }
  func.func @transform_5(%arg0: i32) -> (i32, i32) {
    %c0_i32 = arith.constant 0 : i32
    %c0_i32_0 = arith.constant 0 : i32
    %c0_i32_1 = arith.constant 0 : i32
    return %c0_i32, %c0_i32_0 : i32, i32
  }
  func.func @transform_6(%arg0: i32) -> (i32, i32) {
    %c0_i32 = arith.constant 0 : i32
    %c0_i32_0 = arith.constant 0 : i32
    %c0_i32_1 = arith.constant 0 : i32
    return %c0_i32, %c0_i32_0 : i32, i32
  }
  func.func @transform_7(%arg0: i32) -> (i32, i32, i32, i32) {
    %c0_i32 = arith.constant 0 : i32
    %c0_i32_0 = arith.constant 0 : i32
    %c0_i32_1 = arith.constant 0 : i32
    %c0_i32_2 = arith.constant 0 : i32
    return %arg0, %c0_i32, %c0_i32_0, %c0_i32_1 : i32, i32, i32, i32
  }
}

</mosaic_0001>

<bundles_post_ra>
// kernel: basic_block_forward.1
= control target key start
LH: loop header
LB: loop body
LE: loop exit
PB: predicated region body
PF: predicated region fallthrough
CT: control target
= control target key end

     0   :  { %s4308_s24 = smov 0   ;;  %s5218_s0 = inlined_call_operand.vmem [shape: bf16[2,4,9,9,4], index: 0, kind: input, shape index: {}]   ;;  %s5219_s1 = inlined_call_operand.vmem [shape: bf16[9,4,8], index: 1, kind: input, shape index: {}]   ;;  %s5220_s2 = inlined_call_operand.vmem [shape: f32[1,8], index: 2, kind: input, shape index: {}]   ;;  %s5221_s3 = inlined_call_operand.vmem [shape: bf16[9,8,8], index: 3, kind: input, shape index: {}]   ;;  %s5222_s4 = inlined_call_operand.vmem [shape: f32[1,8], index: 4, kind: input, shape index: {}]   ;;  %s5223_s5 = inlined_call_operand.vmem [shape: bf16[4,8], index: 5, kind: input, shape index: {}]   ;;  %s5224_s6 = inlined_call_operand.vmem [shape: f32[1,8], index: 6, kind: input, shape index: {}]   ;;  %s5225_s7 = inlined_call_operand.vmem [shape: bf16[2,8,8,8], index: 7, kind: output, shape index: {}]  }
   0x1 LB: > { %s3600_s25 = sadd.s32 4294967295, %s4265_s24   ;;  %p3604_p0 = scmp.ge.s32.totalorder %s4265_s24, 1  ;;  %s4265_s24 = sphi %s4308_s24, %s17_s24  }
   0x2   : > { %p237_p1 = scmp.lt.s32.totalorder %s4265_s24, 3 }
   0x4   : > { %p238_p2 = pnand %p3604_p0, %p237_p1 }
   0x6   : > { %241 = sbr.rel (%p238_p2) target bundleno = 618 (0x26a), region = 48 }
   0xb   : > { %v3616_v0 = vld [vmem:[%s5219_s1 + $0x2] sm:$0x3]  ;;  %vm333_vm0 = vcmask 1041408   ;;  %p269_p3 = scmp.lt.s32.totalorder %s3600_s25, 1  ;;  %v288_v2 = vld [vmem:[%s5219_s1] sm:$0x3] }
   0xc   : > { %4190 = vmatprep.subr.msk.bf16.mxu1 %vm333_vm0, %v3616_v0  ;;  %4189 = vmatprep.subr.msk.bf16.mxu0 %vm333_vm0, %v3616_v0  ;;  %v335_v1 = vsel %vm333_vm0, %v3616_v0, 0  ;;  %v3633_v3 = vld [vmem:[%s5219_s1 + $0x4] sm:$0x3]  ;;  %vm320_vm1 = vcmask 31744   ;;  %v435_v4 = vsel %vm333_vm0, %v288_v2, 0  ;;  %vm1694_vm5 = vcmask 60416  }
   0xd   : > { %4188 = vmatpush3.bf16.msra.mxu1 %v335_v1  ;;  %3998 = vmatpush3.bf16.msra.mxu0 %v335_v1  ;;  %s5248_s25 = smov (!%p269_p3, %s3600_s25), 1  ;;  %v660_v5 = vsel %vm333_vm0, %v3633_v3, 0  ;;  %v3650_v7 = vld [vmem:[%s5219_s1 + $0x6] sm:$0x3]  ;;  %v3667_v8 = vld [vmem:[%s5219_s1 + $0x8] sm:$0x3] }
   0xe   : > { %4191 = vmatprep.subr.msk.bf16.mxu1 %vm333_vm0, %v288_v2  ;;  %4192 = vmatprep.subr.msk.bf16.mxu0 %vm333_vm0, %v3633_v3  ;;  %s4209_s9 = smul.u32 288, %s5248_s25  ;;  %vm518_vm2 = vsmask.f32 3328  ;;  %vm519_vm3 = vsmask.f32 7440  ;;  %v779_v13 = vsel %vm333_vm0, %v3650_v7, 0 }
   0xf   : > { %v4357_v14 = vsel %vm333_vm0, %v3667_v8, 0  ;;  %v4374_v38 = vld [vmem:[%s5219_s1 + $0xa] sm:$0x3]  ;;  %vm4378_vm4 = vmor %vm518_vm2, %vm519_vm3  ;;  %vm1696_vm6 = vcmask 57344   ;;  %vm2039_vm7 = vcmask 1043456   ;;  %vm2232_vm8 = vcmask 1042432  }
  0x10   : > { %s4336_s12 = scalar_lea.vmem %s5218_s0, %s4209_s9  ;;  %vm2233_vm9 = vcmask 1046532   ;;  %vm1830_vm10 = vsmask.f32 7938  ;;  %vm1836_vm12 = vsmask.f32 256  ;;  %vm2026_vm15 = vcmask 64512  }
  0x11   : > { %v4219_v6 = vld [vmem:[%s4336_s12 + $0x48] ss:$8 sps:$4 sm:$0xff]   ;;  %v4221_v10 = vld [vmem:[%s4336_s12 + $0x58] ss:$8 sps:$4 sm:$0xff]   ;;  %v503_v16 = vld [vmem:[%s4336_s12 + $0x4] sm:$0x1] }
  0x12   : > { %v4220_v9 = vld [vmem:[%s4336_s12 + $0x68] ss:$8 sps:$4 sm:$0xff]   ;;  %3999 = vmatprep.mubr.msk.bf16.mxu0 %vm320_vm1, %v4219_v6  ;;  %v4222_v11 = vld [vmem:[%s4336_s12 + $0x78] ss:$8 sps:$4 sm:$0xff]   ;;  %v505_v19 = vld [vmem:[%s4336_s12 + $0xc] sm:$0x1] }
  0x13   : > { %4003 = vmatprep.mubr.msk.bf16.mxu1 %vm320_vm1, %v4220_v9  ;;  %4000 = vmatmul.mubr.msk.bf16.vlgmr.msra.gmra.mxu0 %vm320_vm1, %v4221_v10  ;;  %v4223_v12 = vld [vmem:[%s4336_s12] ss:$8 sps:$4 sm:$0xff]   ;;  %v4224_v18 = vld [vmem:[%s4336_s12 + $0x10] ss:$8 sps:$4 sm:$0xff]   ;;  %v531_v22 = vshll.u32 %v503_v16, 16  ;;  %v545_v25 = vshll.u32 %v505_v19, 16  ;;  %vm4663_vm11 = vmor %vm2232_vm8, %vm2233_vm9 }
  0x14   : > { %4004 = vmatmul.mubr.msk.bf16.vlgmr.msra.gmra.mxu1 %vm320_vm1, %v4222_v11  ;;  %4018 = vmatpush3.bf16.msra.mxu0 %v660_v5  ;;  %v502_v15 = vld [vmem:[%s4336_s12] sm:$0xf]  ;;  %v504_v17 = vld [vmem:[%s4336_s12 + $0x8] sm:$0xf]  ;;  %v506_v26 = vld [vmem:[%s4336_s12 + $0x10] sm:$0xf] }
  0x15   : > { %4008 = vmatpush3.bf16.msra.mxu1 %v435_v4  ;;  %4009 = vmatprep.mubr.msk.bf16.mxu1 %vm320_vm1, %v4223_v12  ;;  %v522_v20 = vshrl.u32 %v502_v15, 16  ;;  %v525_v21 = vshll.u32 %v502_v15, 16  ;;  %v536_v23 = vshrl.u32 %v504_v17, 16  ;;  %v539_v24 = vshll.u32 %v504_v17, 16  ;;  %v507_v27 = vld [vmem:[%s4336_s12 + $0x14] sm:$0x1]  ;;  %vm4716_vm13 = vmand %vm1694_vm5, %vm1830_vm10 }
  0x16   : > { %4193 = vmatprep.subr.msk.bf16.mxu1 %vm333_vm0, %v3650_v7  ;;  %4194 = vmatprep.subr.msk.bf16.mxu0 %vm333_vm0, %v3667_v8  ;;  %v533_v30 = vrot.slane %v531_v22, 5  ;;  %v508_v32 = vld [vmem:[%s4336_s12 + $0x18] sm:$0xf]  ;;  %v547_v34 = vrot.slane %v545_v25, 5  ;;  %v509_v35 = vld [vmem:[%s4336_s12 + $0x1c] sm:$0x1]  ;;  %vm4722_vm14 = vmand %vm1696_vm6, %vm1836_vm12 }
  0x17   : > { %v524_v28 = vrot.slane %v522_v20, 4  ;;  %v527_v29 = vrot.slane %v525_v21, 5  ;;  %v538_v31 = vrot.slane %v536_v23, 4  ;;  %v541_v33 = vrot.slane %v539_v24, 5  ;;  %v4225_v52 = vld [vmem:[%s4336_s12 + $0x20] ss:$8 sps:$4 sm:$0xff]  }
  0x18   : > { %v550_v36 = vshrl.u32 %v506_v26, 16  ;;  %v553_v37 = vshll.u32 %v506_v26, 16  ;;  %v559_v40 = vshll.u32 %v507_v27, 16  ;;  %v564_v41 = vshrl.u32 %v508_v32, 16  ;;  %v4226_v58 = vld [vmem:[%s4336_s12 + $0x30] ss:$8 sps:$4 sm:$0xff]  }
  0x19   : > { %v528_v39 = vor.u32 %v527_v29, %v524_v28  ;;  %v567_v42 = vshll.u32 %v508_v32, 16  ;;  %v542_v44 = vor.u32 %v541_v33, %v538_v31  ;;  %v573_v47 = vshll.u32 %v509_v35, 16  ;;  %v510_v59 = vld [vmem:[%s4336_s12 + $0x20] sm:$0xf]  ;;  %v511_v60 = vld [vmem:[%s4336_s12 + $0x24] sm:$0x1] }
  0x1a   : > { %v552_v45 = vrot.slane %v550_v36, 4  ;;  %v555_v46 = vrot.slane %v553_v37, 5  ;;  %v561_v49 = vrot.slane %v559_v40, 5  ;;  %v566_v50 = vrot.slane %v564_v41, 4  ;;  %v512_v63 = vld [vmem:[%s4336_s12 + $0x28] sm:$0xf] }
  0x1b   : > { %v529_v48 = vrot.slane %v528_v39, 4  ;;  %v569_v51 = vrot.slane %v567_v42, 5  ;;  %v543_v53 = vrot.slane %v542_v44, 4  ;;  %v575_v55 = vrot.slane %v573_v47, 5  ;;  %v513_v0 = vld [vmem:[%s4336_s12 + $0x2c] sm:$0x1] }
  0x1c   : > { %4010 = vmatmul.mubr.msk.bf16.vlgmr.msra.gmra.mxu1 %vm320_vm1, %v4224_v18  ;;  %v556_v54 = vor.u32 %v555_v46, %v552_v45  ;;  %v578_v1 = vshrl.u32 %v510_v59, 16  ;;  %v581_v4 = vshll.u32 %v510_v59, 16  ;;  %v587_v5 = vshll.u32 %v511_v60, 16  ;;  %v514_v6 = vld [vmem:[%s4336_s12 + $0x30] sm:$0xf]  ;;  %s3893_s9 = sshll.u32 %s5248_s25, 5 }
  0x1d   : > { %4028 = vmatpush3.bf16.msra.mxu1 %v779_v13  ;;  %v534_v56 = vsel %vm4378_vm4, %v529_v48, %v533_v30  ;;  %v570_v57 = vor.u32 %v569_v51, %v566_v50  ;;  %4013 = vmatprep.mubr.msk.bf16.mxu1 %vm320_vm1, %v4225_v52  ;;  %v548_v61 = vsel %vm4378_vm4, %v543_v53, %v547_v34  ;;  %v592_v9 = vshrl.u32 %v512_v63, 16  ;;  %v515_v11 = vld [vmem:[%s4336_s12 + $0x34] sm:$0x1]  ;;  %v516_v17 = vld [vmem:[%s4336_s12 + $0x38] sm:$0xf]  ;;  %s5183_s11 = scalar_lea.vmem %s5225_s7, %s3893_s9 }
  0x1e   : > { %4195 = vmatprep.subr.msk.bf16.mxu1 %vm333_vm0, %v4374_v38  ;;  %v557_v62 = vrot.slane %v556_v54, 4  ;;  %v3634_v2 = vcombine.low %v534_v56, %v548_v61  ;;  %v580_v8 = vrot.slane %v578_v1, 4  ;;  %v595_v10 = vshll.u32 %v512_v63, 16  ;;  %v3709_v18 = vld [vmem:[%s5219_s1 + $0xc] sm:$0x3] }
  0x1f   : > { %v571_v3 = vrot.slane %v570_v57, 4  ;;  %v583_v13 = vrot.slane %v581_v4, 5  ;;  %v589_v15 = vrot.slane %v587_v5, 5  ;;  %v601_v16 = vshll.u32 %v513_v0, 16  ;;  %v517_v22 = vld [vmem:[%s4336_s12 + $0x3c] sm:$0x1] }
  0x20   : > { %v562_v7 = vsel %vm4378_vm4, %v557_v62, %v561_v49  ;;  %4019 = vmatprep.mubr.msk.bf16.mxu0 %vm320_vm1, %v3634_v2  ;;  %v594_v20 = vrot.slane %v592_v9, 4  ;;  %v597_v21 = vrot.slane %v595_v10, 5  ;;  %v606_v23 = vshrl.u32 %v514_v6, 16  ;;  %v4227_v35 = vld [vmem:[%s4336_s12 + $0x90] ss:$8 sps:$4 sm:$0xff]  }
  0x21   : > { %v576_v12 = vsel %vm4378_vm4, %v571_v3, %v575_v55  ;;  %v584_v24 = vor.u32 %v583_v13, %v580_v8  ;;  %v603_v25 = vrot.slane %v601_v16, 5  ;;  %v609_v26 = vshll.u32 %v514_v6, 16  ;;  %v4228_v44 = vld [vmem:[%s4336_s12 + $0xa0] ss:$8 sps:$4 sm:$0xff]   ;;  %v3726_v51 = vld [vmem:[%s5219_s1 + $0xe] sm:$0x3] }
  0x22   : > { %v3635_v19 = vcombine.low %v562_v7, %v576_v12  ;;  %v615_v27 = vshll.u32 %v515_v11, 16  ;;  %v598_v28 = vor.u32 %v597_v21, %v594_v20  ;;  %v608_v29 = vrot.slane %v606_v23, 4  ;;  %v4231_v53 = vld [vmem:[%s4336_s12 + $0xb0] ss:$8 sps:$4 sm:$0xff]   ;;  %v4232_v57 = vld [vmem:[%s4336_s12 + $0xc0] ss:$8 sps:$4 sm:$0xff]  }
  0x23   : > { %v620_v30 = vshrl.u32 %v516_v17, 16  ;;  %v623_v31 = vshll.u32 %v516_v17, 16  ;;  %v585_v32 = vrot.slane %v584_v24, 4  ;;  %v611_v33 = vrot.slane %v609_v26, 5  ;;  %v3677_v59 = vld [vmem:[%s4336_s12 + $0x94] sm:$0x1] }
  0x24   : > { %4014 = vmatmul.mubr.msk.bf16.gmra.mxu1 %vm320_vm1, %v4226_v58  ;;  %4020 = vmatmul.mubr.msk.bf16.vlgmr.msra.gmra.mxu0 %vm320_vm1, %v3635_v19  ;;  %v629_v34 = vshll.u32 %v517_v22, 16  ;;  %v599_v36 = vrot.slane %v598_v28, 4  ;;  %v617_v42 = vrot.slane %v615_v27, 5  ;;  %v1128_v49 = vsel %vm333_vm0, %v4374_v38, 0  ;;  %v4229_v38 = vld [vmem:[%s4336_s12 + $0xd8] ss:$8 sps:$4 sm:$0xff]  }
  0x25   : > { %4038 = vmatpush3.bf16.msra.mxu0 %v4357_v14  ;;  %v622_v37 = vrot.slane %v620_v30, 4  ;;  %v625_v39 = vrot.slane %v623_v31, 5  ;;  %v590_v40 = vsel %vm4378_vm4, %v585_v32, %v589_v15  ;;  %v612_v41 = vor.u32 %v611_v33, %v608_v29  ;;  %4029 = vmatprep.mubr.msk.bf16.mxu1 %vm320_vm1, %v4227_v35  ;;  %v3676_v58 = vld [vmem:[%s4336_s12 + $0x90] sm:$0xf]  ;;  %v3678_v60 = vld [vmem:[%s4336_s12 + $0x98] sm:$0xf] }
  0x26   : > { %4196 = vmatprep.subr.msk.bf16.mxu0 %vm333_vm0, %v3709_v18  ;;  %v604_v14 = vsel %vm4378_vm4, %v599_v36, %v603_v25  ;;  %v631_v46 = vrot.slane %v629_v34, 5  ;;  %v1247_v56 = vsel %vm333_vm0, %v3709_v18, 0  ;;  %v3679_v61 = vld [vmem:[%s4336_s12 + $0x9c] sm:$0x1]  ;;  %v990_v62 = vshrl.u32 %v3676_v58, 16 }
  0x27   : > { %v626_v45 = vor.u32 %v625_v39, %v622_v37  ;;  %v3636_v47 = vcombine.low %v590_v40, %v604_v14  ;;  %v613_v48 = vrot.slane %v612_v41, 4  ;;  %v993_v63 = vshll.u32 %v3676_v58, 16  ;;  %v3680_v2 = vld [vmem:[%s4336_s12 + $0xa0] sm:$0xf]  ;;  %v4230_v3 = vld [vmem:[%s4336_s12 + $0xe8] ss:$8 sps:$4 sm:$0xff]  }
  0x28   : > { %v999_v0 = vshll.u32 %v3677_v59, 16  ;;  %v1004_v1 = vshrl.u32 %v3678_v60, 16  ;;  %v1007_v4 = vshll.u32 %v3678_v60, 16  ;;  %v1013_v5 = vshll.u32 %v3679_v61, 16  ;;  %v3681_v6 = vld [vmem:[%s4336_s12 + $0xa4] sm:$0x1] }
  0x29   : > { %v627_v50 = vrot.slane %v626_v45, 4  ;;  %4023 = vmatprep.mubr.msk.bf16.mxu0 %vm320_vm1, %v3636_v47  ;;  %v618_v52 = vsel %vm4378_vm4, %v613_v48, %v617_v42  ;;  %v3682_v7 = vld [vmem:[%s4336_s12 + $0xa8] sm:$0xf]  ;;  %v4233_v8 = vld [vmem:[%s4336_s12 + $0xf8] ss:$8 sps:$4 sm:$0xff]   ;;  %v992_v9 = vrot.slane %v990_v62, 4 }
  0x2a   : > { %v995_v10 = vrot.slane %v993_v63, 5  ;;  %v1001_v11 = vrot.slane %v999_v0, 5  ;;  %v1006_v12 = vrot.slane %v1004_v1, 4  ;;  %v3683_v13 = vld [vmem:[%s4336_s12 + $0xac] sm:$0x1]  ;;  %v1009_v15 = vrot.slane %v1007_v4, 5 }
  0x2b   : > { %v632_v54 = vsel %vm4378_vm4, %v627_v50, %v631_v46  ;;  %v1015_v16 = vrot.slane %v1013_v5, 5  ;;  %v1018_v17 = vshrl.u32 %v3680_v2, 16  ;;  %v1021_v18 = vshll.u32 %v3680_v2, 16  ;;  %v4452_v27 = vld [vmem:[%s5219_s1 + $0x10] sm:$0x3] }
  0x2c   : > { %4030 = vmatmul.mubr.msk.bf16.vlgmr.msra.gmra.mxu1 %vm320_vm1, %v4228_v44  ;;  %v3637_v55 = vcombine.low %v618_v52, %v632_v54  ;;  %v996_v19 = vor.u32 %v995_v10, %v992_v9  ;;  %v1027_v20 = vshll.u32 %v3681_v6, 16  ;;  %v1032_v21 = vshrl.u32 %v3682_v7, 16  ;;  %v3684_v39 = vld [vmem:[%s4336_s12 + $0xb0] sm:$0xf]  ;;  %v3685_v40 = vld [vmem:[%s4336_s12 + $0xb4] sm:$0x1] }
  0x2d   : > { %4048 = vmatpush3.bf16.msra.mxu1 %v1128_v49  ;;  %4033 = vmatprep.mubr.msk.bf16.mxu1 %vm320_vm1, %v4231_v53  ;;  %v1035_v22 = vshll.u32 %v3682_v7, 16  ;;  %v1010_v23 = vor.u32 %v1009_v15, %v1006_v12  ;;  %v1020_v24 = vrot.slane %v1018_v17, 4  ;;  %v1023_v25 = vrot.slane %v1021_v18, 5  ;;  %v3686_v41 = vld [vmem:[%s4336_s12 + $0xb8] sm:$0xf] }
  0x2e   : > { %4197 = vmatprep.subr.msk.bf16.mxu1 %vm333_vm0, %v3726_v51  ;;  %4024 = vmatmul.mubr.msk.bf16.gmra.mxu0 %vm320_vm1, %v3637_v55  ;;  %v1041_v26 = vshll.u32 %v3683_v13, 16  ;;  %v997_v28 = vrot.slane %v996_v19, 4  ;;  %v1034_v29 = vrot.slane %v1032_v21, 4  ;;  %v1366_v31 = vsel %vm333_vm0, %v3726_v51, 0  ;;  %v4234_v42 = vld [vmem:[%s4336_s12 + $0x108] ss:$8 sps:$4 sm:$0xff]  }
  0x2f   : > { %4039 = vmatprep.mubr.msk.bf16.mxu0 %vm320_vm1, %v4229_v38  ;;  %v1037_v30 = vrot.slane %v1035_v22, 5  ;;  %v1011_v32 = vrot.slane %v1010_v23, 4  ;;  %v1024_v33 = vor.u32 %v1023_v25, %v1020_v24  ;;  %v1029_v34 = vrot.slane %v1027_v20, 5  ;;  %v3687_v45 = vld [vmem:[%s4336_s12 + $0xbc] sm:$0x1] }
  0x30   : > { %v1043_v35 = vrot.slane %v1041_v26, 5  ;;  %v1002_v36 = vsel %vm4378_vm4, %v997_v28, %v1001_v11  ;;  %v1046_v46 = vshrl.u32 %v3684_v39, 16  ;;  %v1049_v47 = vshll.u32 %v3684_v39, 16  ;;  %v4235_v50 = vld [vmem:[%s4336_s12 + $0x8] ss:$8 sps:$4 sm:$0xff]  }
  0x31   : > { %v1038_v37 = vor.u32 %v1037_v30, %v1034_v29  ;;  %v1016_v44 = vsel %vm4378_vm4, %v1011_v32, %v1015_v16  ;;  %v1025_v14 = vrot.slane %v1024_v33, 4  ;;  %v1055_v51 = vshll.u32 %v3685_v40, 16  ;;  %v3688_v53 = vld [vmem:[%s4336_s12 + $0xc0] sm:$0xf]  ;;  %v3690_v62 = vld [vmem:[%s4336_s12 + $0xc8] sm:$0xf] }
  0x32   : > { %v3693_v48 = vcombine.low %v1002_v36, %v1016_v44  ;;  %v1060_v52 = vshrl.u32 %v3686_v41, 16  ;;  %v1048_v38 = vrot.slane %v1046_v46, 4  ;;  %v1051_v55 = vrot.slane %v1049_v47, 5  ;;  %v3691_v2 = vld [vmem:[%s4336_s12 + $0xcc] sm:$0x1] }
  0x33   : > { %v1039_v49 = vrot.slane %v1038_v37, 4  ;;  %v1030_v54 = vsel %vm4378_vm4, %v1025_v14, %v1029_v34  ;;  %v1057_v59 = vrot.slane %v1055_v51, 5  ;;  %v1069_v61 = vshll.u32 %v3687_v45, 16  ;;  %v4236_v16 = vld [vmem:[%s4336_s12 + $0x18] ss:$8 sps:$4 sm:$0xff]  }
  0x34   : > { %4034 = vmatmul.mubr.msk.bf16.gmra.mxu1 %vm320_vm1, %v4232_v57  ;;  %v3689_v57 = vld [vmem:[%s4336_s12 + $0xc4] sm:$0x1]  ;;  %v1062_v60 = vrot.slane %v1060_v52, 4  ;;  %v1052_v0 = vor.u32 %v1051_v55, %v1048_v38  ;;  %v1077_v5 = vshll.u32 %v3688_v53, 16  ;;  %v1088_v7 = vshrl.u32 %v3690_v62, 16 }
  0x35   : > { %4049 = vmatprep.mubr.msk.bf16.mxu1 %vm320_vm1, %v3693_v48  ;;  %v1044_v58 = vsel %vm4378_vm4, %v1039_v49, %v1043_v35  ;;  %v1071_v4 = vrot.slane %v1069_v61, 5  ;;  %v1083_v6 = vshll.u32 %v3689_v57, 16  ;;  %v1091_v11 = vshll.u32 %v3690_v62, 16  ;;  %v4237_v29 = vld [vmem:[%s4336_s12 + $0x28] ss:$8 sps:$4 sm:$0xff]  }
  0x36   : > { %4040 = vmatmul.mubr.msk.bf16.vlgmr.msra.gmra.mxu0 %vm320_vm1, %v4230_v3  ;;  %v3694_v63 = vcombine.low %v1030_v54, %v1044_v58  ;;  %v1074_v3 = vshrl.u32 %v3688_v53, 16  ;;  %v1079_v12 = vrot.slane %v1077_v5, 5  ;;  %v1090_v13 = vrot.slane %v1088_v7, 4  ;;  %v3735_v30 = vld [vmem:[%s4336_s12 + $0x8] sm:$0xf] }
  0x37   : > { %4058 = vmatpush3.bf16.msra.mxu0 %v1247_v56  ;;  %4043 = vmatprep.mubr.msk.bf16.mxu0 %vm320_vm1, %v4233_v8  ;;  %v1063_v56 = vshll.u32 %v3686_v41, 16  ;;  %v1053_v8 = vrot.slane %v1052_v0, 4  ;;  %v1097_v15 = vshll.u32 %v3691_v2, 16  ;;  %v1093_v19 = vrot.slane %v1091_v11, 5  ;;  %v4239_v32 = vld [vmem:[%s4336_s12 + $0x50] ss:$8 sps:$4 sm:$0xff]  }
  0x38   : > { %4198 = vmatprep.subr.msk.bf16.mxu0 %vm333_vm0, %v4452_v27  ;;  %v1076_v10 = vrot.slane %v1074_v3, 4  ;;  %v1085_v21 = vrot.slane %v1083_v6, 5  ;;  %v1596_v25 = vsel %vm333_vm0, %v4452_v27, 0  ;;  %v3736_v33 = vld [vmem:[%s4336_s12 + $0xc] sm:$0x1]  ;;  %v1458_v35 = vshrl.u32 %v3735_v30, 16 }
  0x39   : > { %v1065_v1 = vrot.slane %v1063_v56, 5  ;;  %v1058_v17 = vsel %vm4378_vm4, %v1053_v8, %v1057_v59  ;;  %v1094_v23 = vor.u32 %v1093_v19, %v1090_v13  ;;  %v1099_v24 = vrot.slane %v1097_v15, 5  ;;  %v3737_v34 = vld [vmem:[%s4336_s12 + $0x10] sm:$0xf]  ;;  %v3738_v37 = vld [vmem:[%s4336_s12 + $0x14] sm:$0x1] }
  0x3a   : > { %v1080_v20 = vor.u32 %v1079_v12, %v1076_v10  ;;  %v1461_v39 = vshll.u32 %v3735_v30, 16  ;;  %v1467_v27 = vshll.u32 %v3736_v33, 16  ;;  %v1472_v40 = vshrl.u32 %v3737_v34, 16  ;;  %v3739_v45 = vld [vmem:[%s4336_s12 + $0x18] sm:$0xf] }
  0x3b   : > { %v1066_v9 = vor.u32 %v1065_v1, %v1062_v60  ;;  %v1475_v44 = vshll.u32 %v3737_v34, 16  ;;  %v1481_v14 = vshll.u32 %v3738_v37, 16  ;;  %v4238_v51 = vld [vmem:[%s4336_s12 + $0x38] ss:$8 sps:$4 sm:$0xff]   ;;  %v3742_v38 = vld [vmem:[%s4336_s12 + $0x24] sm:$0x1] }
  0x3c   : > { %4050 = vmatmul.mubr.msk.bf16.vlgmr.msra.gmra.mxu1 %vm320_vm1, %v3694_v63  ;;  %v1081_v28 = vrot.slane %v1080_v20, 4  ;;  %v1463_v47 = vrot.slane %v1461_v39, 5  ;;  %v1469_v48 = vrot.slane %v1467_v27, 5  ;;  %v1474_v49 = vrot.slane %v1472_v40, 4  ;;  %v3741_v54 = vld [vmem:[%s4336_s12 + $0x20] sm:$0xf] }
  0x3d   : > { %4068 = vmatpush3.bf16.msra.mxu1 %v1366_v31  ;;  %v1067_v18 = vrot.slane %v1066_v9, 4  ;;  %v1095_v31 = vrot.slane %v1094_v23, 4  ;;  %v1477_v52 = vrot.slane %v1475_v44, 5  ;;  %v1483_v53 = vrot.slane %v1481_v14, 5  ;;  %v4240_v63 = vld [vmem:[%s4336_s12 + $0x60] ss:$8 sps:$4 sm:$0xff]  }
  0x3e   : > { %4044 = vmatmul.mubr.msk.bf16.gmra.mxu0 %vm320_vm1, %v4234_v42  ;;  %v1086_v36 = vsel %vm4378_vm4, %v1081_v28, %v1085_v21  ;;  %v1460_v42 = vrot.slane %v1458_v35, 4  ;;  %v1486_v56 = vshrl.u32 %v3739_v45, 16  ;;  %v1489_v57 = vshll.u32 %v3739_v45, 16  ;;  %v4241_v6 = vld [vmem:[%s4336_s12 + $0x70] ss:$8 sps:$4 sm:$0xff]  }
  0x3f   : > { %4059 = vmatprep.mubr.msk.bf16.mxu0 %vm320_vm1, %v4235_v50  ;;  %v1072_v22 = vsel %vm4378_vm4, %v1067_v18, %v1071_v4  ;;  %v1100_v41 = vsel %vm4378_vm4, %v1095_v31, %v1099_v24  ;;  %v3740_v50 = vld [vmem:[%s4336_s12 + $0x1c] sm:$0x1]  ;;  %v1478_v59 = vor.u32 %v1477_v52, %v1474_v49  ;;  %v1500_v60 = vshrl.u32 %v3741_v54, 16  ;;  %v3743_v11 = vld [vmem:[%s4336_s12 + $0x28] sm:$0xf] }
  0x40   : > { %v3695_v26 = vcombine.low %v1058_v17, %v1072_v22  ;;  %v3696_v46 = vcombine.low %v1086_v36, %v1100_v41  ;;  %v1464_v55 = vor.u32 %v1463_v47, %v1460_v42  ;;  %v1495_v58 = vshll.u32 %v3740_v50, 16  ;;  %v3744_v15 = vld [vmem:[%s4336_s12 + $0x2c] sm:$0x1]  ;;  %v3746_v17 = vld [vmem:[%s4336_s12 + $0x34] sm:$0x1] }
  0x41   : > { %v1503_v61 = vshll.u32 %v3741_v54, 16  ;;  %v1509_v62 = vshll.u32 %v3742_v38, 16  ;;  %v1488_v1 = vrot.slane %v1486_v56, 4  ;;  %v1491_v2 = vrot.slane %v1489_v57, 5  ;;  %v3747_v22 = vld [vmem:[%s4336_s12 + $0x38] sm:$0xf] }
  0x42   : > { %4053 = vmatprep.mubr.msk.bf16.mxu1 %vm320_vm1, %v3695_v26  ;;  %v1465_v0 = vrot.slane %v1464_v55, 4  ;;  %v1479_v3 = vrot.slane %v1478_v59, 4  ;;  %v1502_v4 = vrot.slane %v1500_v60, 4  ;;  %v1497_v9 = vrot.slane %v1495_v58, 5  ;;  %v3748_v28 = vld [vmem:[%s4336_s12 + $0x3c] sm:$0x1] }
  0x43   : > { %v1505_v5 = vrot.slane %v1503_v61, 5  ;;  %v1492_v8 = vor.u32 %v1491_v2, %v1488_v1  ;;  %v1511_v10 = vrot.slane %v1509_v62, 5  ;;  %v1514_v20 = vshrl.u32 %v3743_v11, 16  ;;  %v3749_v33 = vld [vmem:[%s4336_s12 + $0x40] sm:$0xf] }
  0x44   : > { %4054 = vmatmul.mubr.msk.bf16.gmra.mxu1 %vm320_vm1, %v3696_v46  ;;  %v1470_v7 = vsel %vm4378_vm4, %v1465_v0, %v1469_v48  ;;  %v1484_v12 = vsel %vm4378_vm4, %v1479_v3, %v1483_v53  ;;  %v1517_v21 = vshll.u32 %v3743_v11, 16  ;;  %v1523_v24 = vshll.u32 %v3744_v15, 16  ;;  %v3750_v39 = vld [vmem:[%s4336_s12 + $0x44] sm:$0x1]  ;;  %v4242_v40 = vld [vmem:[%s4336_s12 + $0x80] ss:$8 sps:$4 sm:$0xff]  }
  0x45   : > { %4069 = vmatprep.mubr.msk.bf16.mxu1 %vm320_vm1, %v4239_v32  ;;  %v1506_v13 = vor.u32 %v1505_v5, %v1502_v4  ;;  %v3752_v18 = vcombine.low %v1470_v7, %v1484_v12  ;;  %v1493_v19 = vrot.slane %v1492_v8, 4  ;;  %v1516_v30 = vrot.slane %v1514_v20, 4  ;;  %v1891_v4 = vld [vmem:[%s5221_s3] sm:$0xf]  ;;  %v4576_v8 = vld [vmem:[%s5221_s3 + $0x8] sm:$0xf] }
  0x46   : > { %4060 = vmatmul.mubr.msk.bf16.vlgmr.msra.gmra.mxu0 %vm320_vm1, %v4236_v16  ;;  %v3745_v16 = vld [vmem:[%s4336_s12 + $0x30] sm:$0xf]  ;;  %v1519_v31 = vrot.slane %v1517_v21, 5  ;;  %v1537_v32 = vshll.u32 %v3746_v17, 16  ;;  %v1525_v35 = vrot.slane %v1523_v24, 5  ;;  %v1542_v44 = vshrl.u32 %v3747_v22, 16 }
  0x47   : > { %4078 = vmatpush3.bf16.msra.mxu0 %v1596_v25  ;;  %4063 = vmatprep.mubr.msk.bf16.mxu0 %vm320_vm1, %v4237_v29  ;;  %v1507_v23 = vrot.slane %v1506_v13, 4  ;;  %v1528_v25 = vshrl.u32 %v3745_v16, 16  ;;  %v1531_v26 = vshll.u32 %v3745_v16, 16  ;;  %v1498_v29 = vsel %vm4378_vm4, %v1493_v19, %v1497_v9  ;;  %v4583_v9 = vld [vmem:[%s5221_s3 + $0xc] sm:$0xf] }
  0x48   : > { %v1520_v41 = vor.u32 %v1519_v31, %v1516_v30  ;;  %v1539_v42 = vrot.slane %v1537_v32, 5  ;;  %v1545_v45 = vshll.u32 %v3747_v22, 16  ;;  %v1551_v46 = vshll.u32 %v3748_v28, 16  ;;  %4200 = vmatprep.subr.msk.bf16.mxu0 %vm2039_vm7, %v1891_v4 }
  0x49   : > { %v1512_v34 = vsel %vm4378_vm4, %v1507_v23, %v1511_v10  ;;  %v1530_v36 = vrot.slane %v1528_v25, 4  ;;  %v1533_v37 = vrot.slane %v1531_v26, 5  ;;  %v1556_v47 = vshrl.u32 %v3749_v33, 16 }
  0x4a   : > { %v3753_v27 = vcombine.low %v1498_v29, %v1512_v34  ;;  %v1521_v48 = vrot.slane %v1520_v41, 4  ;;  %v1544_v49 = vrot.slane %v1542_v44, 4  ;;  %v1559_v50 = vshll.u32 %v3749_v33, 16 }
  0x4b   : > { %v1534_v14 = vor.u32 %v1533_v37, %v1530_v36  ;;  %v1547_v53 = vrot.slane %v1545_v45, 5  ;;  %v1558_v54 = vrot.slane %v1556_v47, 4  ;;  %v1553_v58 = vrot.slane %v1551_v46, 5 }
  0x4c   : > { %4070 = vmatmul.mubr.msk.bf16.vlgmr.msra.gmra.mxu1 %vm320_vm1, %v4240_v63  ;;  %v1526_v38 = vsel %vm4378_vm4, %v1521_v48, %v1525_v35  ;;  %v1561_v55 = vrot.slane %v1559_v50, 5  ;;  %v4267_v3 = vmov 0   ;;  %v2141_v5 = vsel %vm2039_vm7, %v1891_v4, 0 }
  0x4d   : > { %4073 = vmatprep.mubr.msk.bf16.mxu1 %vm320_vm1, %v4241_v6  ;;  %v1535_v52 = vrot.slane %v1534_v14, 4  ;;  %v1548_v57 = vor.u32 %v1547_v53, %v1544_v49  ;;  %1702 = vst.msk [vmem:[#allocation2 + $0x18] sm:$0xf] %vm1694_vm5, %v4267_v3  ;;  %1695 = vst.msk [vmem:[#allocation2] sm:$0xf] %vm1694_vm5, %v4267_v3 }
  0x4e   : > { %4064 = vmatmul.mubr.msk.bf16.gmra.mxu0 %vm320_vm1, %v4238_v51  ;;  %v1565_v51 = vshll.u32 %v3750_v39, 16  ;;  %v1562_v60 = vor.u32 %v1561_v55, %v1558_v54  ;;  %1703 = vst.msk [vmem:[#allocation2 + $0x1c] sm:$0x1] %vm1696_vm6, %v4267_v3  ;;  %1697 = vst.msk [vmem:[#allocation2 + $0x4] sm:$0x1] %vm1696_vm6, %v4267_v3 }
  0x4f   : > { %4079 = vmatprep.mubr.msk.bf16.mxu0 %vm320_vm1, %v3752_v18  ;;  %v1540_v56 = vsel %vm4378_vm4, %v1535_v52, %v1539_v42  ;;  %v1549_v62 = vrot.slane %v1548_v57, 4  ;;  %1698 = vst.msk [vmem:[#allocation2 + $0x8] sm:$0xf] %vm1694_vm5, %v4267_v3  ;;  %1700 = vst.msk [vmem:[#allocation2 + $0x10] sm:$0xf] %vm1694_vm5, %v4267_v3 }
  0x50   : > { %v3754_v59 = vcombine.low %v1526_v38, %v1540_v56  ;;  %v1567_v61 = vrot.slane %v1565_v51, 5  ;;  %v1563_v63 = vrot.slane %v1562_v60, 4  ;;  %1699 = vst.msk [vmem:[#allocation2 + $0xc] sm:$0x1] %vm1696_vm6, %v4267_v3  ;;  %1701 = vst.msk [vmem:[#allocation2 + $0x14] sm:$0x1] %vm1696_vm6, %v4267_v3 }
  0x51   : > { %v1554_v0 = vsel %vm4378_vm4, %v1549_v62, %v1553_v58  ;;  %1704 = vst.msk [vmem:[#allocation2 + $0x20] sm:$0xf] %vm1694_vm5, %v4267_v3  ;;  %1706 = vst.msk [vmem:[#allocation2 + $0x28] sm:$0xf] %vm1694_vm5, %v4267_v3  ;;  %v3769_v6 = vld [vmem:[%s5221_s3 + $0x4] sm:$0xf] }
  0x52   : > { %v1568_v1 = vsel %vm4378_vm4, %v1563_v63, %v1567_v61  ;;  %1705 = vst.msk [vmem:[#allocation2 + $0x24] sm:$0x1] %vm1696_vm6, %v4267_v3  ;;  %1707 = vst.msk [vmem:[#allocation2 + $0x2c] sm:$0x1] %vm1696_vm6, %v4267_v3  ;;  %4199 = vmatprep.subr.msk.bf16.mxu1 %vm2039_vm7, %v3769_v6  ;;  %v2041_v7 = vsel %vm2039_vm7, %v3769_v6, 0 }
  0x53   : > { %v3755_v2 = vcombine.low %v1554_v0, %v1568_v1  ;;  %1708 = vst.msk [vmem:[#allocation2 + $0x30] sm:$0xf] %vm1694_vm5, %v4267_v3  ;;  %1710 = vst.msk [vmem:[#allocation2 + $0x38] sm:$0xf] %vm1694_vm5, %v4267_v3  ;;  %4088 = vmatpush3.bf16.msra.mxu1 %v2041_v7 }
  0x54   : > { %4074 = vmatmul.mubr.msk.bf16.gmra.mxu1 %vm320_vm1, %v4242_v40  ;;  %1709 = vst.msk [vmem:[#allocation2 + $0x34] sm:$0x1] %vm1696_vm6, %v4267_v3  ;;  %1711 = vst.msk [vmem:[#allocation2 + $0x3c] sm:$0x1] %vm1696_vm6, %v4267_v3  ;;  %4201 = vmatprep.subr.msk.bf16.mxu1 %vm2039_vm7, %v4576_v8  ;;  %v4615_v53 = vld [vmem:[#allocation2] sm:$0xf] }
  0x55   : > { %1712 = vst.msk [vmem:[#allocation2 + $0x40] sm:$0xf] %vm1694_vm5, %v4267_v3  ;;  %1714 = vst.msk [vmem:[#allocation2 + $0x48] sm:$0xf] %vm1694_vm5, %v4267_v3  ;;  %v1901_v57 = vshrl.u32 %v4615_v53, 16  ;;  %v1904_v58 = vshll.u32 %v4615_v53, 16 }
  0x56   : > { %4080 = vmatmul.mubr.msk.bf16.vlgmr.msra.gmra.mxu0 %vm320_vm1, %v3753_v27  ;;  %1713 = vst.msk [vmem:[#allocation2 + $0x44] sm:$0x1] %vm1696_vm6, %v4267_v3  ;;  %1715 = vst.msk [vmem:[#allocation2 + $0x4c] sm:$0x1] %vm1696_vm6, %v4267_v3 }
  0x57   : > { %4083 = vmatprep.mubr.msk.bf16.mxu0 %vm320_vm1, %v3754_v59  ;;  %4098 = vmatpush3.bf16.msra.mxu0 %v2141_v5  ;;  %5229 = vst [vmem:[#allocation3_spill] sm:$0xff] %v4615_v53  ;;  %v1903_v3 = vrot.slane %v1901_v57, 4  ;;  %v1906_v4 = vrot.slane %v1904_v58, 5 }
  0x58   : > { %4202 = vmatprep.subr.msk.bf16.mxu0 %vm2039_vm7, %v4583_v9 }
  0x5e   : > { %4084 = vmatmul.mubr.msk.bf16.gmra.mxu0 %vm320_vm1, %v3755_v2 }
  0xd3   : > { %v4001_v12 = vpop.f32.mrf.mxu0 }
  0xd4   : > { %v4587_v10 = vpop.f32.mrf.mxu1 }
  0xd5   : > { %v371_v16 = vpop.f32.mrf.mxu0 }
  0xd6   : > { %v4589_v11 = vpop.f32.mrf.mxu1 }
  0xd7   : > { %v4002_v19 = vpop.f32.mrf.mxu0 }
  0xd8   : > { %v4591_v13 = vpop.f32.mrf.mxu1 }
  0xd9   : > { %v374_v22 = vpop.f32.mrf.mxu0 }
  0xda   : > { %v4593_v15 = vpop.f32.mrf.mxu1 }
  0xdc   : > { %v4011_v17 = vpop.f32.mrf.mxu1 }
  0xdd   : > { %v480_v52 = vadd.f32 %v4011_v17, %v4001_v12 }
  0xde   : > { %v471_v18 = vpop.f32.mrf.mxu1 }
  0xdf   : > { %v472_v55 = vadd.f32 %v471_v18, %v371_v16  ;;  %v1892_v16 = vld [vmem:[#allocation2 + $0x4] sm:$0x1] }
  0xe0   : > { %v4012_v20 = vpop.f32.mrf.mxu1 }
  0xe1   : > { %v483_v60 = vadd.f32 %v4012_v20, %v4002_v19  ;;  %v1910_v19 = vshll.u32 %v1892_v16, 16 }
  0xe2   : > { %v474_v21 = vpop.f32.mrf.mxu1 }
  0xe3   : > { %v475_v0 = vadd.f32 %v474_v21, %v374_v22  ;;  %v1907_v21 = vor.u32 %v1906_v4, %v1903_v3  ;;  %v4636_v57 = vrot.slane %v1910_v19, 5  ;;  %v4676_v19 = vsel %vm2039_vm7, %v4576_v8, 0 }
  0xe4   : > { %v4015_v23 = vpop.f32.mrf.mxu1  ;;  %v4021_v24 = vpop.f32.mrf.mxu0 }
  0xe5   : > { %v729_v59 = vadd.f32 %v4021_v24, %v480_v52  ;;  %v496_v20 = vadd.f32 %v4015_v23, %v4587_v10  ;;  %v2208_v10 = vld [vmem:[#allocation2] sm:$0xe] }
  0xe6   : > { %v487_v25 = vpop.f32.mrf.mxu1  ;;  %v696_v26 = vpop.f32.mrf.mxu0  ;;  %v3786_v58 = vrot.slane %v2208_v10, 9 }
  0xe7   : > { %v727_v63 = vadd.f32 %v696_v26, %v472_v55 }
  0xe8   : > { %v4016_v28 = vpop.f32.mrf.mxu1  ;;  %v4022_v29 = vpop.f32.mrf.mxu0 }
  0xe9   : > { %v730_v5 = vadd.f32 %v4022_v29, %v483_v60  ;;  %v488_v29 = vadd.f32 %v487_v25, %v4589_v11 }
  0xea   : > { %v4595_v30 = vpop.f32.mrf.mxu1  ;;  %v699_v31 = vpop.f32.mrf.mxu0 }
  0xeb   : > { %v728_v17 = vadd.f32 %v699_v31, %v475_v0 }
  0xec   : > { %v4031_v32 = vpop.f32.mrf.mxu1 }
  0xed   : > { %v848_v1 = vadd.f32 %v4031_v32, %v729_v59 }
  0xee   : > { %v815_v33 = vpop.f32.mrf.mxu1  ;;  %v4025_v34 = vpop.f32.mrf.mxu0 }
  0xef   : > { %v846_v6 = vadd.f32 %v815_v33, %v727_v63  ;;  %v499_v33 = vadd.f32 %v4016_v28, %v4591_v13  ;;  %v733_v23 = vadd.f32 %v4025_v34, %v496_v20  ;;  %v2237_v63 = vrot.slane %v1892_v16, 5 }
  0xf0   : > { %v4032_v35 = vpop.f32.mrf.mxu1  ;;  %v4597_v36 = vpop.f32.mrf.mxu0 }
  0xf2   : > { %v818_v37 = vpop.f32.mrf.mxu1  ;;  %v4599_v39 = vpop.f32.mrf.mxu0 }
  0xf3   : > { %v847_v26 = vadd.f32 %v818_v37, %v728_v17  ;;  %v491_v37 = vadd.f32 %v4595_v30, %v4593_v15 }
  0xf4   : > { %v4601_v27 = vpop.f32.mrf.mxu1  ;;  %v4603_v40 = vpop.f32.mrf.mxu0 }
  0xf5   : > { %v732_v0 = vadd.f32 %v4603_v40, %v491_v37 }
  0xf6   : > { %v4605_v41 = vpop.f32.mrf.mxu1  ;;  %v4041_v42 = vpop.f32.mrf.mxu0 }
  0xf7   : > { %v967_v18 = vadd.f32 %v4041_v42, %v848_v1 }
  0xf8   : > { %v4607_v44 = vpop.f32.mrf.mxu1  ;;  %v934_v14 = vpop.f32.mrf.mxu0 }
  0xf9   : > { %v965_v22 = vadd.f32 %v934_v14, %v846_v6  ;;  %v3008_v6 = vld [vmem:[#allocation2 + $0x48] sm:$0xf] }
  0xfa   : > { %v4042_v45 = vpop.f32.mrf.mxu0  ;;  %v4609_v46 = vpop.f32.mrf.mxu1  ;;  %v3112_v37 = vshll.u32 %v3008_v6, 16 }
  0xfc   : > { %v937_v47 = vpop.f32.mrf.mxu0  ;;  %v4051_v49 = vpop.f32.mrf.mxu1 }
  0xfd   : > { %v1197_v32 = vadd.f32 %v4051_v49, %v967_v18  ;;  %v4642_v49 = vrot.slane %v1907_v21, 4  ;;  %v966_v11 = vadd.f32 %v937_v47, %v847_v26  ;;  %v4681_v26 = vsel %vm2039_vm7, %v4583_v9, 0 }
  0xfe   : > { %v4611_v48 = vpop.f32.mrf.mxu0  ;;  %v1164_v51 = vpop.f32.mrf.mxu1 }
  0xff   : > { %v1913_v40 = vsel %vm4378_vm4, %v4642_v49, %v4636_v57 }
 0x100   : > { %v4613_v50 = vpop.f32.mrf.mxu0  ;;  %v4052_v38 = vpop.f32.mrf.mxu1 }
 0x102   : > { %v4617_v54 = vpop.f32.mrf.mxu0  ;;  %v1167_v61 = vpop.f32.mrf.mxu1 }
 0x103   : > { %v1196_v15 = vadd.f32 %v1167_v61, %v966_v11  ;;  %v4655_v61 = vld [vmem:[%s5220_s2] ss:$0 sm:$0xff] }
 0x104   : > { %v4619_v56 = vpop.f32.mrf.mxu0  ;;  %v4623_v7 = vpop.f32.mrf.mxu1 }
 0x105   : > { %5230 = vst [vmem:[#allocation4_spill] sm:$0xff] %v4619_v56  ;;  %v849_v56 = vadd.f32 %v4032_v35, %v730_v5  ;;  %v1195_v35 = vadd.f32 %v1164_v51, %v965_v22  ;;  %v734_v51 = vadd.f32 %v4599_v39, %v499_v33  ;;  %v4669_v5 = vsel %vm4663_vm11, %v3786_v58, %v2237_v63 }
 0x106   : > { %v4061_v62 = vpop.f32.mrf.mxu0  ;;  %v4625_v53 = vpop.f32.mrf.mxu1 }
 0x107   : > { %v968_v31 = vadd.f32 %v4042_v45, %v849_v56  ;;  %v1316_v13 = vadd.f32 %v4061_v62, %v1197_v32  ;;  %v731_v45 = vadd.f32 %v4597_v36, %v488_v29  ;;  %v852_v56 = vadd.f32 %v4601_v27, %v733_v23 }
 0x108   : > { %v1283_v2 = vpop.f32.mrf.mxu0  ;;  %v4628_v52 = vpop.f32.mrf.mxu1  ;;  %v851_v27 = vadd.f32 %v4609_v46, %v732_v0 }
 0x109   : > { %v1198_v25 = vadd.f32 %v4052_v38, %v968_v31  ;;  %v1314_v59 = vadd.f32 %v1283_v2, %v1195_v35  ;;  %v850_v47 = vadd.f32 %v4605_v41, %v731_v45  ;;  %v853_v38 = vadd.f32 %v4607_v44, %v734_v51 }
 0x10a   : > { %v4062_v12 = vpop.f32.mrf.mxu0  ;;  %v4634_v42 = vpop.f32.mrf.mxu1  ;;  %v971_v39 = vadd.f32 %v4611_v48, %v852_v56  ;;  %v3109_v31 = vshrl.u32 %v3008_v6, 16 }
 0x10b   : > { %v1317_v1 = vadd.f32 %v4062_v12, %v1198_v25  ;;  %v969_v12 = vadd.f32 %v4613_v50, %v850_v47  ;;  %v972_v16 = vadd.f32 %v4617_v54, %v853_v38  ;;  %v4686_v50 = vld [vmem:[%s5221_s3 + $0x10] sm:$0xf]  ;;  %v4691_v54 = vld [vmem:[%s5221_s3 + $0x14] sm:$0xf]  ;;  %v4711_v47 = vrot.slane %v3112_v37, 5 }
 0x10c   : > { %v1286_v24 = vpop.f32.mrf.mxu0  ;;  %v4071_v28 = vpop.f32.mrf.mxu1  ;;  %v1201_v17 = vadd.f32 %v4623_v7, %v971_v39  ;;  %v5233_v8 = vld [vmem:[#allocation4_spill] sm:$0xff] }
 0x10d   : > { %v1435_v30 = vadd.f32 %v4071_v28, %v1316_v13  ;;  %v1315_v44 = vadd.f32 %v1286_v24, %v1196_v15  ;;  %v970_v7 = vadd.f32 %v5233_v8, %v851_v27  ;;  %v1199_v32 = vadd.f32 %v4625_v53, %v969_v12  ;;  %v1838_v8 = vld [vmem:[#allocation2 + $0xc] sm:$0x1] }
 0x10e   : > { %v4632_v55 = vpop.f32.mrf.mxu0  ;;  %v1402_v60 = vpop.f32.mrf.mxu1  ;;  %v1202_v29 = vadd.f32 %v4628_v52, %v972_v16  ;;  %v4701_v28 = vsel %vm2039_vm7, %v4686_v50, 0  ;;  %v4705_v53 = vsel %vm2039_vm7, %v4691_v54, 0 }
 0x10f   : > { %v1433_v36 = vadd.f32 %v1402_v60, %v1314_v59  ;;  %v1320_v11 = vadd.f32 %v4632_v55, %v1201_v17  ;;  %v1200_v13 = vadd.f32 %v4634_v42, %v970_v7  ;;  %v4709_v42 = vrot.slane %v3109_v31, 4 }
 0x110   : > { %v4640_v14 = vpop.f32.mrf.mxu0  ;;  %v4072_v3 = vpop.f32.mrf.mxu1 }
 0x111   : > { %v1436_v48 = vadd.f32 %v4072_v3, %v1317_v1  ;;  %v1318_v59 = vadd.f32 %v4640_v14, %v1199_v32 }
 0x112   : > { %v4066_v34 = vpop.f32.mrf.mxu0  ;;  %v1405_v2 = vpop.f32.mrf.mxu1 }
 0x113   : > { %v1434_v21 = vadd.f32 %v1405_v2, %v1315_v44  ;;  %v1321_v55 = vadd.f32 %v4066_v34, %v1202_v29 }
 0x114   : > { %v1302_v62 = vpop.f32.mrf.mxu0  ;;  %v4075_v22 = vpop.f32.mrf.mxu1 }
 0x115   : > { %v1439_v15 = vadd.f32 %v4075_v22, %v1320_v11  ;;  %v1319_v38 = vadd.f32 %v1302_v62, %v1200_v13  ;;  %v1847_v62 = vld [vmem:[#allocation2 + $0x18] sm:$0xf]  ;;  %v1832_v22 = vld [vmem:[#allocation2 + $0x8] sm:$0xf] }
 0x116   : > { %v4081_v4 = vpop.f32.mrf.mxu0  ;;  %v1418_v23 = vpop.f32.mrf.mxu1 }
 0x117   : > { %v1665_v46 = vadd.f32 %v4081_v4, %v1435_v30  ;;  %v1437_v3 = vadd.f32 %v1418_v23, %v1318_v59  ;;  %v1856_v59 = vld [vmem:[#allocation2 + $0x24] sm:$0x1] }
 0x118   : > { %v1632_v18 = vpop.f32.mrf.mxu0  ;;  %v4076_v58 = vpop.f32.mrf.mxu1 }
 0x119   : > { %v1680_v20 = vadd.f32 %v4655_v61, %v1665_v46  ;;  %v1663_v24 = vadd.f32 %v1632_v18, %v1433_v36  ;;  %v1440_v39 = vadd.f32 %v4076_v58, %v1321_v55  ;;  %v1853_v58 = vld [vmem:[#allocation2 + $0x20] sm:$0xf] }
 0x11a   : > { %v4082_v33 = vpop.f32.mrf.mxu0  ;;  %v1421_v0 = vpop.f32.mrf.mxu1 }
 0x11b   : > { %v1688_v9 = vmax.f32 %v1680_v20, 0.0  ;;  %v1678_v35 = vadd.f32 %v4655_v61, %v1663_v24  ;;  %v1666_v10 = vadd.f32 %v4082_v33, %v1436_v48  ;;  %v1850_v48 = vld [vmem:[#allocation2 + $0x1c] sm:$0x1]  ;;  %v1438_v17 = vadd.f32 %v1421_v0, %v1319_v38 }
 0x11c   : > { %v1635_v25 = vpop.f32.mrf.mxu0  ;;  %v4744_v38 = vld [vmem:[%s5221_s3 + $0x1c] sm:$0xf] }
 0x11d   : > { %v3896_v52 = vpack.c.bf16 %v1688_v9, %v1688_v9  ;;  %v1686_v45 = vmax.f32 %v1678_v35, 0.0  ;;  %v1681_v51 = vadd.f32 %v4655_v61, %v1666_v10  ;;  %v1664_v56 = vadd.f32 %v1635_v25, %v1434_v21 }
 0x11e   : > { %v4085_v36 = vpop.f32.mrf.mxu0 }
 0x11f   : > { %v1765_v30 = vshrl.u32 %v3896_v52, 16  ;;  %v3894_v60 = vpack.c.bf16 %v1686_v45, %v1686_v45  ;;  %v1689_v63 = vmax.f32 %v1681_v51, 0.0  ;;  %v1679_v1 = vadd.f32 %v4655_v61, %v1664_v56  ;;  %v4734_v45 = vld [vmem:[%s5221_s3 + $0x18] sm:$0xf] }
 0x120   : > { %v1768_v4 = vshll.u32 %v3896_v52, 16  ;;  %v1669_v12 = vadd.f32 %v4085_v36, %v1439_v15  ;;  %v1648_v16 = vpop.f32.mrf.mxu0  ;;  %v1844_v36 = vld [vmem:[#allocation2 + $0x14] sm:$0x1] }
 0x121   : > { %v1767_v27 = vrot.slane %v1765_v30, 7  ;;  %v1749_v34 = vshrl.u32 %v3894_v60, 16  ;;  %v3897_v44 = vpack.c.bf16 %v1689_v63, %v1689_v63  ;;  %v1752_v2 = vshll.u32 %v3894_v60, 16 }
 0x122   : > { %v1687_v6 = vmax.f32 %v1679_v1, 0.0  ;;  %v1684_v29 = vadd.f32 %v4655_v61, %v1669_v12  ;;  %v1667_v33 = vadd.f32 %v1648_v16, %v1437_v3  ;;  %v4086_v31 = vpop.f32.mrf.mxu0  ;;  %v1841_v1 = vld [vmem:[#allocation2 + $0x10] sm:$0xf]  ;;  %v4757_v16 = vsel %vm2039_vm7, %v4744_v38, 0 }
 0x123   : > { %v1770_v18 = vor.u32 %v1768_v4, %v1767_v27  ;;  %v1771_v20 = vrot.slane %v1767_v27, 4  ;;  %v1751_v24 = vrot.slane %v1749_v34, 7  ;;  %v1773_v21 = vshrl.u32 %v3897_v44, 16 }
 0x124   : > { %v1776_v7 = vshll.u32 %v3897_v44, 16  ;;  %v3895_v32 = vpack.c.bf16 %v1687_v6, %v1687_v6  ;;  %v1692_v25 = vmax.f32 %v1684_v29, 0.0  ;;  %v1651_v52 = vpop.f32.mrf.mxu0  ;;  %v1682_v55 = vadd.f32 %v4655_v61, %v1667_v33 }
 0x125   : > { %v1848_v9 = vsel %vm4716_vm13, %v1770_v18, %v1847_v62  ;;  %v1851_v35 = vsel %vm4722_vm14, %v1771_v20, %v1850_v48  ;;  %v1754_v10 = vor.u32 %v1752_v2, %v1751_v24  ;;  %v1755_v23 = vrot.slane %v1751_v24, 4  ;;  %v1871_v20 = vld [vmem:[#allocation2 + $0x38] sm:$0xf]  ;;  %v1874_v24 = vld [vmem:[#allocation2 + $0x3c] sm:$0x1] }
 0x126   : > { %1849 = vst [vmem:[#allocation2 + $0x18] sm:$0xf] %v1848_v9  ;;  %1852 = vst [vmem:[#allocation2 + $0x1c] sm:$0x1] %v1851_v35  ;;  %v1775_v37 = vrot.slane %v1773_v21, 7  ;;  %v1757_v11 = vshrl.u32 %v3895_v32, 16  ;;  %v1670_v15 = vadd.f32 %v4086_v31, %v1440_v39  ;;  %v3900_v0 = vpack.c.bf16 %v1692_v25, %v1692_v25 }
 0x127   : > { %v1760_v13 = vshll.u32 %v3895_v32, 16  ;;  %v1833_v51 = vsel %vm4716_vm13, %v1754_v10, %v1832_v22  ;;  %v1839_v56 = vsel %vm4722_vm14, %v1755_v23, %v1838_v8  ;;  %v1690_v3 = vmax.f32 %v1682_v55, 0.0  ;;  %v1859_v9 = vld [vmem:[#allocation2 + $0x28] sm:$0xf] }
 0x128   : > { %1834 = vst [vmem:[#allocation2 + $0x8] sm:$0xf] %v1833_v51  ;;  %1840 = vst [vmem:[#allocation2 + $0xc] sm:$0x1] %v1839_v56  ;;  %v1778_v30 = vor.u32 %v1776_v7, %v1775_v37  ;;  %v1779_v60 = vrot.slane %v1775_v37, 4  ;;  %v1759_v63 = vrot.slane %v1757_v11, 7  ;;  %v1685_v27 = vadd.f32 %v4655_v61, %v1670_v15 }
 0x129   : > { %v1668_v4 = vadd.f32 %v1651_v52, %v1438_v17  ;;  %v4749_v39 = vsel %vm2039_vm7, %v4734_v45, 0  ;;  %v1797_v2 = vshrl.u32 %v3900_v0, 16  ;;  %v3898_v6 = vpack.c.bf16 %v1690_v3, %v1690_v3  ;;  %v1862_v52 = vld [vmem:[#allocation2 + $0x2c] sm:$0x1] }
 0x12a   : > { %v1854_v34 = vsel %vm4716_vm13, %v1778_v30, %v1853_v58  ;;  %v1857_v44 = vsel %vm4722_vm14, %v1779_v60, %v1856_v59  ;;  %v1762_v62 = vor.u32 %v1760_v13, %v1759_v63  ;;  %v1763_v48 = vrot.slane %v1759_v63, 4  ;;  %v1877_v63 = vld [vmem:[#allocation2 + $0x40] sm:$0xf] }
 0x12b   : > { %1855 = vst [vmem:[#allocation2 + $0x20] sm:$0xf] %v1854_v34  ;;  %1858 = vst [vmem:[#allocation2 + $0x24] sm:$0x1] %v1857_v44  ;;  %v1693_v12 = vmax.f32 %v1685_v27, 0.0  ;;  %v1683_v21 = vadd.f32 %v4655_v61, %v1668_v4  ;;  %v3115_v22 = vor.u32 %v4711_v47, %v4709_v42  ;;  %v1799_v8 = vrot.slane %v1797_v2, 7 }
 0x12c   : > { %v1842_v17 = vsel %vm4716_vm13, %v1762_v62, %v1841_v1  ;;  %v1845_v18 = vsel %vm4722_vm14, %v1763_v48, %v1844_v36  ;;  %v1800_v7 = vshll.u32 %v3900_v0, 16  ;;  %v1781_v32 = vshrl.u32 %v3898_v6, 16  ;;  %v1880_v1 = vld [vmem:[#allocation2 + $0x44] sm:$0x1]  ;;  %v1865_v44 = vld [vmem:[#allocation2 + $0x30] sm:$0xf] }
 0x12d   : > { %1843 = vst [vmem:[#allocation2 + $0x10] sm:$0xf] %v1842_v17  ;;  %1846 = vst [vmem:[#allocation2 + $0x14] sm:$0x1] %v1845_v18  ;;  %v3901_v29 = vpack.c.bf16 %v1693_v12, %v1693_v12  ;;  %v1886_v33 = vld [vmem:[#allocation2 + $0x18] sm:$0xf] }
 0x12e   : > { %v1784_v31 = vshll.u32 %v3898_v6, 16  ;;  %v1691_v35 = vmax.f32 %v1683_v21, 0.0  ;;  %v1943_v10 = vshrl.u32 %v1886_v33, 16  ;;  %v1946_v23 = vshll.u32 %v1886_v33, 16  ;;  %v1868_v62 = vld [vmem:[#allocation2 + $0x34] sm:$0x1] }
 0x12f   : > { %v1802_v37 = vor.u32 %v1800_v7, %v1799_v8  ;;  %v1803_v11 = vrot.slane %v1799_v8, 4  ;;  %v1783_v13 = vrot.slane %v1781_v32, 7  ;;  %v1805_v25 = vshrl.u32 %v3901_v29, 16  ;;  %v1884_v61 = vld [vmem:[#allocation2 + $0x8] sm:$0xf]  ;;  %v5238_v2 = vld [vmem:[#allocation3_spill] sm:$0xff] }
 0x130   : > { %v1808_v51 = vshll.u32 %v3901_v29, 16  ;;  %v3899_v56 = vpack.c.bf16 %v1691_v35, %v1691_v35  ;;  %v1915_v58 = vshrl.u32 %v1884_v61, 16  ;;  %v1918_v59 = vshll.u32 %v1884_v61, 16 }
 0x131   : > { %v1872_v55 = vsel %vm4716_vm13, %v1802_v37, %v1871_v20  ;;  %v1875_v15 = vsel %vm4722_vm14, %v1803_v11, %v1874_v24  ;;  %v1786_v30 = vor.u32 %v1784_v31, %v1783_v13  ;;  %v1787_v60 = vrot.slane %v1783_v13, 4  ;;  %v4778_v31 = vld [vmem:[#allocation2 + $0xc] sm:$0x1] }
 0x132   : > { %1873 = vst [vmem:[#allocation2 + $0x38] sm:$0xf] %v1872_v55  ;;  %1876 = vst [vmem:[#allocation2 + $0x3c] sm:$0x1] %v1875_v15  ;;  %v1807_v0 = vrot.slane %v1805_v25, 7  ;;  %v1789_v36 = vshrl.u32 %v3899_v56, 16  ;;  %v3778_v6 = vcombine.low %v5238_v2, %v1884_v61 }
 0x133   : > { %v1792_v3 = vshll.u32 %v3899_v56, 16  ;;  %v1917_v27 = vrot.slane %v1915_v58, 4  ;;  %v1860_v4 = vsel %vm4716_vm13, %v1786_v30, %v1859_v9  ;;  %v1863_v34 = vsel %vm4722_vm14, %v1787_v60, %v1862_v52  ;;  %v4775_v12 = vld [vmem:[#allocation2 + $0x20] sm:$0xf]  ;;  %v4794_v58 = vld [vmem:[#allocation2 + $0x1c] sm:$0x1] }
 0x134   : > { %v1920_v48 = vrot.slane %v1918_v59, 5  ;;  %1861 = vst [vmem:[#allocation2 + $0x28] sm:$0xf] %v1860_v4  ;;  %1864 = vst [vmem:[#allocation2 + $0x2c] sm:$0x1] %v1863_v34  ;;  %v1810_v17 = vor.u32 %v1808_v51, %v1807_v0  ;;  %v1811_v18 = vrot.slane %v1807_v0, 4  ;;  %4099 = vmatprep.mubr.msk.bf16.mxu0 %vm2026_vm15, %v3778_v6 }
 0x135   : > { %v1791_v20 = vrot.slane %v1789_v36, 7  ;;  %v1885_v24 = vld [vmem:[#allocation2 + $0x10] sm:$0xf]  ;;  %v1945_v21 = vrot.slane %v1943_v10, 4  ;;  %v1948_v32 = vrot.slane %v1946_v23, 5  ;;  %v1960_v23 = vshll.u32 %v4775_v12, 16 }
 0x136   : > { %v1929_v8 = vshrl.u32 %v1885_v24, 16  ;;  %v1932_v7 = vshll.u32 %v1885_v24, 16  ;;  %v3779_v29 = vcombine.low %v1885_v24, %v1886_v33  ;;  %v1878_v9 = vsel %vm4716_vm13, %v1810_v17, %v1877_v63  ;;  %v4784_v13 = vld [vmem:[#allocation2 + $0x14] sm:$0x1]  ;;  %v4803_v34 = vld [vmem:[#allocation2 + $0x8] sm:$0xe] }
 0x137   : > { %v1881_v35 = vsel %vm4722_vm14, %v1811_v18, %v1880_v1  ;;  %v1794_v37 = vor.u32 %v1792_v3, %v1791_v20  ;;  %v1795_v11 = vrot.slane %v1791_v20, 4  ;;  %1879 = vst [vmem:[#allocation2 + $0x40] sm:$0xf] %v1878_v9  ;;  %v1957_v33 = vshrl.u32 %v4775_v12, 16  ;;  %v4800_v1 = vld [vmem:[#allocation2 + $0x24] sm:$0x1] }
 0x138   : > { %1882 = vst [vmem:[#allocation2 + $0x44] sm:$0x1] %v1881_v35  ;;  %v1931_v10 = vrot.slane %v1929_v8, 4  ;;  %v1934_v25 = vrot.slane %v1932_v7, 5  ;;  %4100 = vmatmul.mubr.msk.bf16.vlgmr.msra.gmra.mxu0 %vm2026_vm15, %v3779_v29  ;;  %v1921_v51 = vor.u32 %v1920_v48, %v1917_v27  ;;  %v1924_v56 = vshll.u32 %v4778_v31, 16 }
 0x139   : > { %v1866_v61 = vsel %vm4716_vm13, %v1794_v37, %v1865_v44  ;;  %v1869_v52 = vsel %vm4722_vm14, %v1795_v11, %v1868_v62  ;;  %4118 = vmatpush3.bf16.msra.mxu0 %v4681_v26  ;;  %v1959_v59 = vrot.slane %v1957_v33, 4  ;;  %v1962_v55 = vrot.slane %v1960_v23, 5  ;;  %v1890_v15 = vld [vmem:[#allocation2 + $0x38] sm:$0xf]  ;;  %v4817_v24 = vld [vmem:[#allocation2 + $0x3c] sm:$0x1] }
 0x13a   : > { %1867 = vst [vmem:[#allocation2 + $0x30] sm:$0xf] %v1866_v61  ;;  %1870 = vst [vmem:[#allocation2 + $0x34] sm:$0x1] %v1869_v52  ;;  %v1935_v30 = vor.u32 %v1934_v25, %v1931_v10  ;;  %v1938_v60 = vshll.u32 %v4784_v13, 16  ;;  %4204 = vmatprep.subr.msk.bf16.mxu0 %vm2039_vm7, %v4691_v54  ;;  %v1922_v14 = vrot.slane %v1921_v51, 4  ;;  %v1949_v27 = vor.u32 %v1948_v32, %v1945_v21 }
 0x13b   : > { %v1926_v46 = vrot.slane %v1924_v56, 5  ;;  %v1999_v63 = vshrl.u32 %v1890_v15, 16  ;;  %v2002_v0 = vshll.u32 %v1890_v15, 16  ;;  %v1888_v36 = vld [vmem:[#allocation2 + $0x28] sm:$0xf]  ;;  %v1952_v4 = vshll.u32 %v4794_v58, 16 }
 0x13c   : > { %v1936_v3 = vrot.slane %v1935_v30, 4  ;;  %v1940_v26 = vrot.slane %v1938_v60, 5  ;;  %v1971_v44 = vshrl.u32 %v1888_v36, 16  ;;  %v1974_v62 = vshll.u32 %v1888_v36, 16  ;;  %v4808_v2 = vld [vmem:[#allocation2 + $0x2c] sm:$0x1] }
 0x13d   : > { %v3780_v48 = vcombine.low %v4775_v12, %v1888_v36  ;;  %v1927_v54 = vsel %vm4378_vm4, %v1922_v14, %v1926_v46  ;;  %v2001_v17 = vrot.slane %v1999_v63, 4  ;;  %v2004_v18 = vrot.slane %v2002_v0, 5  ;;  %v4247_v35 = vld [vmem:[#allocation2 + $0x8] ss:$8 sps:$4 sm:$0xff]   ;;  %v4829_v56 = vld [vmem:[#allocation2 + $0x4c] sm:$0x1] }
 0x13e   : > { %v3770_v6 = vcombine.low %v1913_v40, %v1927_v54  ;;  %v1941_v20 = vsel %vm4378_vm4, %v1936_v3, %v1940_v26  ;;  %v1973_v21 = vrot.slane %v1971_v44, 4  ;;  %v1976_v12 = vrot.slane %v1974_v62, 5  ;;  %v2210_v51 = vld [vmem:[#allocation2 + $0x10] sm:$0xe]  ;;  %v2211_v14 = vld [vmem:[#allocation2 + $0x18] sm:$0xe] }
 0x13f   : > { %4103 = vmatprep.mubr.msk.bf16.mxu0 %vm2026_vm15, %v3780_v48  ;;  %v1950_v8 = vrot.slane %v1949_v27, 4  ;;  %v1954_v7 = vrot.slane %v1952_v4, 5  ;;  %v1963_v32 = vor.u32 %v1962_v55, %v1959_v59  ;;  %v1966_v29 = vshll.u32 %v4800_v1, 16  ;;  %v4834_v3 = vld [vmem:[#allocation2 + $0xc] sm:$0x1] }
 0x140   : > { %4089 = vmatprep.mubr.msk.bf16.mxu1 %vm2026_vm15, %v3770_v6  ;;  %v1980_v57 = vshll.u32 %v4808_v2, 16  ;;  %v2005_v49 = vor.u32 %v2004_v18, %v2001_v17  ;;  %v1977_v37 = vor.u32 %v1976_v12, %v1973_v21  ;;  %v2008_v10 = vshll.u32 %v4817_v24, 16  ;;  %v4843_v4 = vld [vmem:[#allocation2 + $0x14] sm:$0x1]  ;;  %v2718_v6 = vld [vmem:[#allocation2 + $0x10] sm:$0xe] }
 0x141   : > { %v1889_v40 = vld [vmem:[#allocation2 + $0x30] sm:$0xf]  ;;  %v1955_v9 = vsel %vm4378_vm4, %v1950_v8, %v1954_v7  ;;  %v4825_v11 = vld [vmem:[#allocation2 + $0x34] sm:$0x1]  ;;  %v3787_v25 = vrot.slane %v4803_v34, 9  ;;  %v1964_v59 = vrot.slane %v1963_v32, 4 }
 0x142   : > { %v1985_v33 = vshrl.u32 %v1889_v40, 16  ;;  %v1988_v23 = vshll.u32 %v1889_v40, 16  ;;  %v3781_v61 = vcombine.low %v1889_v40, %v1890_v15  ;;  %v3771_v52 = vcombine.low %v1941_v20, %v1955_v9  ;;  %v2717_v34 = vld [vmem:[#allocation2 + $0x8] sm:$0xe]  ;;  %v2212_v17 = vld [vmem:[#allocation2 + $0x20] sm:$0xe] }
 0x143   : > { %v1968_v55 = vrot.slane %v1966_v29, 5  ;;  %v1978_v30 = vrot.slane %v1977_v37, 4  ;;  %v1982_v60 = vrot.slane %v1980_v57, 5  ;;  %v1994_v0 = vshll.u32 %v4825_v11, 16  ;;  %v2213_v12 = vld [vmem:[#allocation2 + $0x28] sm:$0xe] }
 0x144   : > { %v1987_v46 = vrot.slane %v1985_v33, 4  ;;  %v1990_v63 = vrot.slane %v1988_v23, 5  ;;  %4104 = vmatmul.mubr.msk.bf16.gmra.mxu0 %vm2026_vm15, %v3781_v61  ;;  %4090 = vmatmul.mubr.msk.bf16.vlgmr.msra.gmra.mxu1 %vm2026_vm15, %v3771_v52  ;;  %v2006_v36 = vrot.slane %v2005_v49, 4  ;;  %v2241_v27 = vrot.slane %v4778_v31, 5  ;;  %v4248_v8 = vld [vmem:[#allocation2 + $0x18] ss:$8 sps:$4 sm:$0xff]  }
 0x145   : > { %4108 = vmatpush3.bf16.msra.mxu1 %v4676_v19  ;;  %4119 = vmatprep.mubr.msk.bf16.mxu0 %vm2026_vm15, %v4247_v35  ;;  %v1969_v15 = vsel %vm4378_vm4, %v1964_v59, %v1968_v55  ;;  %v1983_v26 = vsel %vm4378_vm4, %v1978_v30, %v1982_v60  ;;  %v3118_v44 = vshll.u32 %v4829_v56, 16  ;;  %v2010_v54 = vrot.slane %v2008_v10, 5  ;;  %v4855_v57 = vld [vmem:[#allocation2 + $0x1c] sm:$0x1]  ;;  %v4857_v49 = vld [vmem:[#allocation2 + $0x24] sm:$0x1] }
 0x146   : > { %v3772_v62 = vcombine.low %v1969_v15, %v1983_v26  ;;  %v1991_v48 = vor.u32 %v1990_v63, %v1987_v46  ;;  %4203 = vmatprep.subr.msk.bf16.mxu1 %vm2039_vm7, %v4686_v50  ;;  %v3788_v19 = vrot.slane %v2210_v51, 9  ;;  %v1996_v18 = vrot.slane %v1994_v0, 5  ;;  %v4249_v40 = vld [vmem:[#allocation2 + $0x28] ss:$8 sps:$4 sm:$0xff]   ;;  %v2719_v10 = vld [vmem:[#allocation2 + $0x18] sm:$0xe] }
 0x147   : > { %v2242_v20 = vsel %vm4663_vm11, %v3787_v25, %v2241_v27  ;;  %v2245_v31 = vrot.slane %v4784_v13, 5  ;;  %v3789_v21 = vrot.slane %v2211_v14, 9  ;;  %v2011_v32 = vsel %vm4378_vm4, %v2006_v36, %v2010_v54  ;;  %v2720_v61 = vld [vmem:[#allocation2 + $0x20] sm:$0xe]  ;;  %v2214_v52 = vld [vmem:[#allocation2 + $0x30] sm:$0xe] }
 0x148   : > { %4093 = vmatprep.mubr.msk.bf16.mxu1 %vm2026_vm15, %v3772_v62  ;;  %v1992_v7 = vrot.slane %v1991_v48, 4  ;;  %v2249_v50 = vrot.slane %v4794_v58, 5  ;;  %v3821_v29 = vrot.slane %v2717_v34, 9  ;;  %v2743_v9 = vrot.slane %v4834_v3, 5  ;;  %v2215_v60 = vld [vmem:[#allocation2 + $0x38] sm:$0xe] }
 0x149   : > { %v4861_v13 = vsel %vm4663_vm11, %v3788_v19, %v2245_v31  ;;  %v3822_v35 = vrot.slane %v2718_v6, 9  ;;  %v2747_v37 = vrot.slane %v4843_v4, 5  ;;  %v3795_v58 = vcombine.low %v4669_v5, %v2242_v20  ;;  %v4877_v14 = vld [vmem:[#allocation2 + $0x2c] sm:$0x1]  ;;  %v4883_v36 = vld [vmem:[#allocation2 + $0x34] sm:$0x1] }
 0x14a   : > { %v1997_v25 = vsel %vm4378_vm4, %v1992_v7, %v1996_v18  ;;  %v4870_v33 = vsel %vm4663_vm11, %v3789_v21, %v2249_v50  ;;  %v3790_v23 = vrot.slane %v2212_v17, 9  ;;  %v2744_v59 = vsel %vm4663_vm11, %v3821_v29, %v2743_v9  ;;  %v2721_v15 = vld [vmem:[#allocation2 + $0x28] sm:$0xe]  ;;  %v2722_v62 = vld [vmem:[#allocation2 + $0x30] sm:$0xe] }
 0x14b   : > { %v3773_v51 = vcombine.low %v1997_v25, %v2011_v32  ;;  %v2748_v55 = vsel %vm4663_vm11, %v3822_v35, %v2747_v37  ;;  %v2253_v30 = vrot.slane %v4800_v1, 5  ;;  %v3796_v5 = vcombine.low %v4861_v13, %v4870_v33  ;;  %v2487_v6 = vld [vmem:[#allocation2 + $0x8] sm:$0xf]  ;;  %v2489_v7 = vld [vmem:[#allocation2 + $0x10] sm:$0xf] }
 0x14c   : > { %4120 = vmatmul.mubr.msk.bf16.vlgmr.msra.gmra.mxu0 %vm2026_vm15, %v4248_v8  ;;  %v3830_v46 = vcombine.low %v2744_v59, %v2748_v55  ;;  %v3791_v63 = vrot.slane %v2213_v12, 9  ;;  %v2257_v0 = vrot.slane %v4808_v2, 5  ;;  %v3823_v1 = vrot.slane %v2719_v10, 9  ;;  %v4926_v37 = vld [vmem:[#allocation2 + $0x44] sm:$0x1] }
 0x14d   : > { %4094 = vmatmul.mubr.msk.bf16.gmra.mxu1 %vm2026_vm15, %v3773_v51  ;;  %4123 = vmatprep.mubr.msk.bf16.mxu0 %vm2026_vm15, %v4249_v40  ;;  %v2751_v26 = vrot.slane %v4855_v57, 5  ;;  %v3824_v27 = vrot.slane %v2720_v61, 9  ;;  %v2755_v34 = vrot.slane %v4857_v49, 5  ;;  %v3792_v2 = vrot.slane %v2214_v52, 9  ;;  %v4915_v40 = vld [vmem:[#allocation2 + $0x3c] sm:$0x1] }
 0x14e   : > { %4109 = vmatprep.mubr.msk.bf16.mxu1 %vm2026_vm15, %v3795_v58  ;;  %v2258_v48 = vsel %vm4663_vm11, %v3791_v63, %v2257_v0  ;;  %4138 = vmatpush3.bf16.msra.mxu0 %v4705_v53  ;;  %v2261_v54 = vrot.slane %v4825_v11, 5  ;;  %v3793_v19 = vrot.slane %v2215_v60, 9  ;;  %v2254_v17 = vsel %vm4663_vm11, %v3790_v23, %v2253_v30  ;;  %v4250_v53 = vld [vmem:[#allocation2 + $0x38] ss:$8 sps:$4 sm:$0xff]  }
 0x14f   : > { %v4898_v18 = vsel %vm4663_vm11, %v3823_v1, %v2751_v26  ;;  %v4902_v20 = vsel %vm4663_vm11, %v3824_v27, %v2755_v34  ;;  %v2265_v31 = vrot.slane %v4817_v24, 5  ;;  %4206 = vmatprep.subr.msk.bf16.mxu0 %vm2039_vm7, %v4744_v38  ;;  %v3797_v11 = vcombine.low %v2254_v17, %v2258_v48  ;;  %v2723_v10 = vld [vmem:[#allocation2 + $0x38] sm:$0xe]  ;;  %v2724_v61 = vld [vmem:[#allocation2 + $0x40] sm:$0xe] }
 0x150   : > { %v3831_v21 = vcombine.low %v4898_v18, %v4902_v20  ;;  %v3825_v12 = vrot.slane %v2721_v15, 9  ;;  %v2759_v8 = vrot.slane %v4877_v14, 5  ;;  %v4912_v32 = vsel %vm4663_vm11, %v3792_v2, %v2261_v54  ;;  %v2491_v55 = vld [vmem:[#allocation2 + $0x18] sm:$0xf]  ;;  %v2493_v15 = vld [vmem:[#allocation2 + $0x20] sm:$0xf] }
 0x151   : > { %v3826_v50 = vrot.slane %v2722_v62, 9  ;;  %v2763_v29 = vrot.slane %v4883_v36, 5  ;;  %v2504_v24 = vshrl.u32 %v2487_v6, 16  ;;  %v4919_v38 = vsel %vm4663_vm11, %v3793_v19, %v2265_v31  ;;  %v2994_v19 = vld [vmem:[#allocation2 + $0x10] sm:$0xf] }
 0x152   : > { %v4923_v13 = vsel %vm4663_vm11, %v3825_v12, %v2759_v8  ;;  %v2507_v9 = vshll.u32 %v2487_v6, 16  ;;  %v2513_v35 = vshll.u32 %v4834_v3, 16  ;;  %v2518_v33 = vshrl.u32 %v2489_v7, 16 }
 0x153   : > { %v2764_v25 = vsel %vm4663_vm11, %v3826_v50, %v2763_v29  ;;  %v2506_v58 = vrot.slane %v2504_v24, 4  ;;  %v2521_v23 = vshll.u32 %v2489_v7, 16  ;;  %v3798_v52 = vcombine.low %v4912_v32, %v4919_v38  ;;  %v2996_v32 = vld [vmem:[#allocation2 + $0x18] sm:$0xf]  ;;  %v4961_v38 = vld [vmem:[#allocation2 + $0x1c] sm:$0x1] }
 0x154   : > { %4124 = vmatmul.mubr.msk.bf16.gmra.mxu0 %vm2026_vm15, %v4250_v53  ;;  %v3832_v51 = vcombine.low %v4923_v13, %v2764_v25  ;;  %v2509_v59 = vrot.slane %v2507_v9, 5  ;;  %v2527_v3 = vshll.u32 %v4843_v4, 16  ;;  %v2520_v30 = vrot.slane %v2518_v33, 4  ;;  %v4966_v13 = vld [vmem:[%s5223_s5] sm:$0x3] }
 0x155   : > { %4110 = vmatmul.mubr.msk.bf16.vlgmr.msra.gmra.mxu1 %vm2026_vm15, %v3796_v5  ;;  %4139 = vmatprep.mubr.msk.bf16.mxu0 %vm2026_vm15, %v3830_v46  ;;  %v2523_v60 = vrot.slane %v2521_v23, 5  ;;  %v3827_v63 = vrot.slane %v2723_v10, 9  ;;  %v2767_v0 = vrot.slane %v4915_v40, 5  ;;  %v2515_v26 = vrot.slane %v2513_v35, 5 }
 0x156   : > { %4128 = vmatpush3.bf16.msra.mxu1 %v4701_v28  ;;  %4113 = vmatprep.mubr.msk.bf16.mxu1 %vm2026_vm15, %v3797_v11  ;;  %v2510_v1 = vor.u32 %v2509_v59, %v2506_v58  ;;  %v3828_v27 = vrot.slane %v2724_v61, 9  ;;  %v2771_v4 = vrot.slane %v4926_v37, 5  ;;  %v2529_v62 = vrot.slane %v2527_v3, 5  ;;  %v4952_v11 = vld [vmem:[#allocation2 + $0x14] sm:$0x1] }
 0x157   : > { %v2524_v34 = vor.u32 %v2523_v60, %v2520_v30  ;;  %4205 = vmatprep.subr.msk.bf16.mxu1 %vm2039_vm7, %v4734_v45  ;;  %v2532_v5 = vshrl.u32 %v2491_v55, 16  ;;  %v2535_v46 = vshll.u32 %v2491_v55, 16  ;;  %v4945_v2 = vsel %vm4663_vm11, %v3827_v63, %v2767_v0  ;;  %v2495_v58 = vld [vmem:[#allocation2 + $0x28] sm:$0xf]  ;;  %v2497_v59 = vld [vmem:[#allocation2 + $0x30] sm:$0xf] }
 0x158   : > { %v2511_v48 = vrot.slane %v2510_v1, 4  ;;  %v4949_v28 = vsel %vm4663_vm11, %v3828_v27, %v2771_v4  ;;  %v2546_v54 = vshrl.u32 %v2493_v15, 16  ;;  %v2541_v53 = vshll.u32 %v4855_v57, 16 }
 0x159   : > { %v2525_v6 = vrot.slane %v2524_v34, 4  ;;  %v2534_v17 = vrot.slane %v2532_v5, 4  ;;  %v2537_v31 = vrot.slane %v2535_v46, 5  ;;  %v3833_v12 = vcombine.low %v4945_v2, %v4949_v28  ;;  %v4988_v2 = vld [vmem:[%s5221_s3 + $0x20] sm:$0xf] }
 0x15a   : > { %v2516_v45 = vsel %vm4378_vm4, %v2511_v48, %v2515_v26  ;;  %v2548_v8 = vrot.slane %v2546_v54, 4  ;;  %v2549_v7 = vshll.u32 %v2493_v15, 16  ;;  %v2555_v24 = vshll.u32 %v4857_v49, 16  ;;  %v3000_v48 = vld [vmem:[#allocation2 + $0x28] sm:$0xf] }
 0x15b   : > { %v2530_v50 = vsel %vm4378_vm4, %v2525_v6, %v2529_v62  ;;  %v2538_v29 = vor.u32 %v2537_v31, %v2534_v17  ;;  %v3011_v57 = vshrl.u32 %v2994_v19, 16  ;;  %v3014_v10 = vshll.u32 %v2994_v19, 16  ;;  %v4990_v17 = vld [vmem:[#allocation2 + $0x24] sm:$0x1] }
 0x15c   : > { %4140 = vmatmul.mubr.msk.bf16.vlgmr.msra.gmra.mxu0 %vm2026_vm15, %v3831_v21  ;;  %v3813_v9 = vcombine.low %v2516_v45, %v2530_v50  ;;  %v2551_v35 = vrot.slane %v2549_v7, 5  ;;  %v3020_v25 = vshll.u32 %v4952_v11, 16  ;;  %v2543_v33 = vrot.slane %v2541_v53, 5 }
 0x15d   : > { %4114 = vmatmul.mubr.msk.bf16.gmra.mxu1 %vm2026_vm15, %v3798_v52  ;;  %4143 = vmatprep.mubr.msk.bf16.mxu0 %vm2026_vm15, %v3832_v51  ;;  %v2539_v49 = vrot.slane %v2538_v29, 4  ;;  %v3013_v23 = vrot.slane %v3011_v57, 4  ;;  %v3025_v61 = vshrl.u32 %v2996_v32, 16  ;;  %v2557_v20 = vrot.slane %v2555_v24, 5 }
 0x15e   : > { %4129 = vmatprep.mubr.msk.bf16.mxu1 %vm2026_vm15, %v3813_v9  ;;  %v2552_v18 = vor.u32 %v2551_v35, %v2548_v8  ;;  %v3016_v21 = vrot.slane %v3014_v10, 5  ;;  %v3028_v3 = vshll.u32 %v2996_v32, 16  ;;  %4158 = vmatpush3.bf16.msra.mxu0 %v4757_v16  ;;  %v3022_v55 = vrot.slane %v3020_v25, 5  ;;  %v2998_v16 = vld [vmem:[#allocation2 + $0x20] sm:$0xf] }
 0x15f   : > { %v3027_v30 = vrot.slane %v3025_v61, 4  ;;  %v3034_v60 = vshll.u32 %v4961_v38, 16  ;;  %v2560_v52 = vshrl.u32 %v2495_v58, 16  ;;  %4208 = vmatprep.subr.msk.bf16.mxu0 %vm333_vm0, %v4966_v13  ;;  %v2563_v15 = vshll.u32 %v2495_v58, 16  ;;  %v4996_v8 = vld [vmem:[#allocation2 + $0x2c] sm:$0x1] }
 0x160   : > { %v2553_v51 = vrot.slane %v2552_v18, 4  ;;  %v3017_v63 = vor.u32 %v3016_v21, %v3013_v23  ;;  %v3030_v0 = vrot.slane %v3028_v3, 5  ;;  %v2544_v1 = vsel %vm4378_vm4, %v2539_v49, %v2543_v33  ;;  %v2499_v9 = vld [vmem:[#allocation2 + $0x38] sm:$0xf]  ;;  %v2501_v49 = vld [vmem:[#allocation2 + $0x40] sm:$0xf] }
 0x161   : > { %v2562_v26 = vrot.slane %v2560_v52, 4  ;;  %v2569_v27 = vshll.u32 %v4877_v14, 16  ;;  %v2574_v4 = vshrl.u32 %v2497_v59, 16  ;;  %v2565_v46 = vrot.slane %v2563_v15, 5 }
 0x162   : > { %v2558_v34 = vsel %vm4378_vm4, %v2553_v51, %v2557_v20  ;;  %v3018_v62 = vrot.slane %v3017_v63, 4  ;;  %v3031_v5 = vor.u32 %v3030_v0, %v3027_v30  ;;  %v3036_v54 = vrot.slane %v3034_v60, 5  ;;  %v3002_v51 = vld [vmem:[#allocation2 + $0x30] sm:$0xf] }
 0x163   : > { %v3814_v28 = vcombine.low %v2544_v1, %v2558_v34  ;;  %v2576_v19 = vrot.slane %v2574_v4, 4  ;;  %v2577_v6 = vshll.u32 %v2497_v59, 16  ;;  %v2566_v53 = vor.u32 %v2565_v46, %v2562_v26  ;;  %v3004_v26 = vld [vmem:[#allocation2 + $0x38] sm:$0xf] }
 0x164   : > { %4144 = vmatmul.mubr.msk.bf16.gmra.mxu0 %vm2026_vm15, %v3833_v12  ;;  %v3023_v14 = vsel %vm4378_vm4, %v3018_v62, %v3022_v55  ;;  %v3032_v31 = vrot.slane %v3031_v5, 4  ;;  %v2583_v45 = vshll.u32 %v4883_v36, 16  ;;  %v3039_v32 = vshrl.u32 %v2998_v16, 16 }
 0x165   : > { %4130 = vmatmul.mubr.msk.bf16.vlgmr.msra.gmra.mxu1 %vm2026_vm15, %v3814_v28  ;;  %v2579_v7 = vrot.slane %v2577_v6, 5  ;;  %v3042_v50 = vshll.u32 %v2998_v16, 16  ;;  %v5002_v29 = vrot.slane %v3115_v22, 4  ;;  %v2567_v24 = vrot.slane %v2566_v53, 4 }
 0x166   : > { %4148 = vmatpush3.bf16.msra.mxu1 %v4749_v39  ;;  %v3037_v12 = vsel %vm4378_vm4, %v3032_v31, %v3036_v54  ;;  %v2571_v57 = vrot.slane %v2569_v27, 5  ;;  %v3053_v36 = vshrl.u32 %v3000_v48, 16  ;;  %v3041_v25 = vrot.slane %v3039_v32, 4 }
 0x167   : > { %v3848_v35 = vcombine.low %v3023_v14, %v3037_v12  ;;  %v2580_v10 = vor.u32 %v2579_v7, %v2576_v19  ;;  %v3044_v58 = vrot.slane %v3042_v50, 5  ;;  %4207 = vmatprep.subr.msk.bf16.mxu1 %vm2039_vm7, %v4988_v2  ;;  %v2585_v42 = vrot.slane %v2583_v45, 5  ;;  %v5025_v19 = vld [vmem:[#allocation2 + $0x34] sm:$0x1]  ;;  %v3006_v45 = vld [vmem:[#allocation2 + $0x40] sm:$0xf] }
 0x168   : > { %v3048_v47 = vshll.u32 %v4990_v17, 16  ;;  %v3055_v22 = vrot.slane %v3053_v36, 4  ;;  %v3056_v39 = vshll.u32 %v3000_v48, 16  ;;  %v3062_v61 = vshll.u32 %v4996_v8, 16  ;;  %v5029_v12 = vld [vmem:[#allocation2 + $0x3c] sm:$0x1] }
 0x169   : > { %4159 = vmatprep.mubr.msk.bf16.mxu0 %vm2026_vm15, %v3848_v35  ;;  %v2581_v33 = vrot.slane %v2580_v10, 4  ;;  %v3045_v23 = vor.u32 %v3044_v58, %v3041_v25  ;;  %v2588_v59 = vshrl.u32 %v2499_v9, 16  ;;  %v2591_v20 = vshll.u32 %v2499_v9, 16  ;;  %v5034_v35 = vld [vmem:[#allocation2 + $0x44] sm:$0x1] }
 0x16a   : > { %v3058_v18 = vrot.slane %v3056_v39, 5  ;;  %v2602_v21 = vshrl.u32 %v2501_v49, 16  ;;  %v5014_v3 = vrot.slane %v3118_v44, 5  ;;  %v2572_v55 = vsel %vm4378_vm4, %v2567_v24, %v2571_v57 }
 0x16b   : > { %v2586_v30 = vsel %vm4378_vm4, %v2581_v33, %v2585_v42  ;;  %v3046_v60 = vrot.slane %v3045_v23, 4  ;;  %v2590_v52 = vrot.slane %v2588_v59, 4  ;;  %v3050_v0 = vrot.slane %v3048_v47, 5 }
 0x16c   : > { %v3815_v63 = vcombine.low %v2572_v55, %v2586_v30  ;;  %v3059_v15 = vor.u32 %v3058_v18, %v3055_v22  ;;  %v2593_v1 = vrot.slane %v2591_v20, 5  ;;  %v3064_v27 = vrot.slane %v3062_v61, 5 }
 0x16d   : > { %v2597_v4 = vshll.u32 %v4915_v40, 16  ;;  %v2604_v16 = vrot.slane %v2602_v21, 4  ;;  %v2605_v44 = vshll.u32 %v2501_v49, 16  ;;  %v3067_v5 = vshrl.u32 %v3002_v51, 16  ;;  %v4251_v21 = vld [vmem:[#allocation2 + $0x10] ss:$8 sps:$4 sm:$0xff]  }
 0x16e   : > { %4133 = vmatprep.mubr.msk.bf16.mxu1 %vm2026_vm15, %v3815_v63  ;;  %v3060_v34 = vrot.slane %v3059_v15, 4  ;;  %v2594_v62 = vor.u32 %v2593_v1, %v2590_v52  ;;  %v3070_v46 = vshll.u32 %v3002_v51, 16  ;;  %v3051_v48 = vsel %vm4378_vm4, %v3046_v60, %v3050_v0 }
 0x16f   : > { %v2607_v28 = vrot.slane %v2605_v44, 5  ;;  %v2611_v54 = vshll.u32 %v4926_v37, 16  ;;  %v3081_v6 = vshrl.u32 %v3004_v26, 16  ;;  %v3069_v31 = vrot.slane %v3067_v5, 4  ;;  %v4252_v44 = vld [vmem:[#allocation2 + $0x20] ss:$8 sps:$4 sm:$0xff]  }
 0x170   : > { %v3065_v40 = vsel %vm4378_vm4, %v3060_v34, %v3064_v27  ;;  %v2595_v14 = vrot.slane %v2594_v62, 4  ;;  %v3072_v53 = vrot.slane %v3070_v46, 5  ;;  %v2599_v32 = vrot.slane %v2597_v4, 5  ;;  %v4255_v27 = vld [vmem:[%s4336_s12 + $0xd8] ss:$8 sps:$4 sm:$0xff]  }
 0x171   : > { %v3849_v7 = vcombine.low %v3051_v48, %v3065_v40  ;;  %v2608_v50 = vor.u32 %v2607_v28, %v2604_v16  ;;  %v3446_v24 = vsel %vm333_vm0, %v4966_v13, 0  ;;  %v3076_v37 = vshll.u32 %v5025_v19, 16  ;;  %v3224_v16 = vld [vmem:[#allocation2 + $0x10] sm:$0xe]  ;;  %v3225_v34 = vld [vmem:[#allocation2 + $0x18] sm:$0xe] }
 0x172   : > { %v3073_v57 = vor.u32 %v3072_v53, %v3069_v31  ;;  %v3083_v36 = vrot.slane %v3081_v6, 4  ;;  %v3084_v9 = vshll.u32 %v3004_v26, 16  ;;  %v2613_v25 = vrot.slane %v2611_v54, 5  ;;  %v4256_v48 = vld [vmem:[%s4336_s12 + $0xe8] ss:$8 sps:$4 sm:$0xff]  }
 0x173   : > { %4160 = vmatmul.mubr.msk.bf16.vlgmr.msra.gmra.mxu0 %vm2026_vm15, %v3849_v7  ;;  %v2609_v10 = vrot.slane %v2608_v50, 4  ;;  %v3095_v58 = vshrl.u32 %v3006_v45, 16  ;;  %v3098_v49 = vshll.u32 %v3006_v45, 16  ;;  %v2600_v42 = vsel %vm4378_vm4, %v2595_v14, %v2599_v32  ;;  %v4257_v28 = vld [vmem:[%s4336_s12 + $0xf8] ss:$8 sps:$4 sm:$0xff]  }
 0x174   : > { %v3074_v47 = vrot.slane %v3073_v57, 4  ;;  %v3086_v22 = vrot.slane %v3084_v9, 5  ;;  %v3090_v13 = vshll.u32 %v5029_v12, 16  ;;  %4178 = vmatpush3.bf16.msra.mxu0 %v3446_v24  ;;  %v3104_v61 = vshll.u32 %v5034_v35, 16  ;;  %v3227_v54 = vld [vmem:[#allocation2 + $0x28] sm:$0xe] }
 0x175   : > { %v2614_v39 = vsel %vm4378_vm4, %v2609_v10, %v2613_v25  ;;  %v3097_v33 = vrot.slane %v3095_v58, 4  ;;  %v3100_v23 = vrot.slane %v3098_v49, 5  ;;  %v3078_v18 = vrot.slane %v3076_v37, 5  ;;  %v3228_v6 = vld [vmem:[#allocation2 + $0x30] sm:$0xe] }
 0x176   : > { %v3816_v59 = vcombine.low %v2600_v42, %v2614_v39  ;;  %v3087_v20 = vor.u32 %v3086_v22, %v3083_v36  ;;  %v3092_v52 = vrot.slane %v3090_v13, 5  ;;  %v3106_v63 = vrot.slane %v3104_v61, 5  ;;  %v4254_v40 = vld [vmem:[#allocation2 + $0x40] ss:$8 sps:$4 sm:$0xff]  }
 0x177   : > { %v3101_v55 = vor.u32 %v3100_v23, %v3097_v33  ;;  %v3079_v30 = vsel %vm4378_vm4, %v3074_v47, %v3078_v18  ;;  %v3121_v0 = vsel %vm4378_vm4, %v5002_v29, %v5014_v3  ;;  %v3307_v29 = vsel %vm2039_vm7, %v4988_v2, 0  ;;  %v4253_v3 = vld [vmem:[#allocation2 + $0x30] ss:$8 sps:$4 sm:$0xff]   ;;  %v3231_v9 = vld [vmem:[#allocation2 + $0x48] sm:$0xe] }
 0x178   : > { %4134 = vmatmul.mubr.msk.bf16.gmra.mxu1 %vm2026_vm15, %v3816_v59  ;;  %v3088_v60 = vrot.slane %v3087_v20, 4  ;;  %v3856_v43 = vrot.slane %v3224_v16, 9  ;;  %v3250_v62 = vrot.slane %v4952_v11, 5  ;;  %v3857_v5 = vrot.slane %v3225_v34, 9  ;;  %v3226_v11 = vld [vmem:[#allocation2 + $0x20] sm:$0xe] }
 0x179   : > { %4149 = vmatprep.mubr.msk.bf16.mxu1 %vm2026_vm15, %v4251_v21  ;;  %v3102_v51 = vrot.slane %v3101_v55, 4  ;;  %v3254_v46 = vrot.slane %v4961_v38, 5  ;;  %v3859_v53 = vrot.slane %v3227_v54, 9  ;;  %v3262_v45 = vrot.slane %v4996_v8, 5  ;;  %v3229_v38 = vld [vmem:[#allocation2 + $0x38] sm:$0xe] }
 0x17a   : > { %v3093_v15 = vsel %vm4378_vm4, %v3088_v60, %v3092_v52  ;;  %v3251_v2 = vsel %vm4663_vm11, %v3856_v43, %v3250_v62  ;;  %v3860_v7 = vrot.slane %v3228_v6, 9  ;;  %v3266_v32 = vrot.slane %v5025_v19, 5  ;;  %v4258_v36 = vld [vmem:[%s4336_s12 + $0x108] ss:$8 sps:$4 sm:$0xff]   ;;  %v3230_v25 = vld [vmem:[#allocation2 + $0x40] sm:$0xe] }
 0x17b   : > { %v3850_v1 = vcombine.low %v3079_v30, %v3093_v15  ;;  %v3107_v26 = vsel %vm4378_vm4, %v3102_v51, %v3106_v63  ;;  %v3255_v14 = vsel %vm4663_vm11, %v3857_v5, %v3254_v46  ;;  %v3858_v50 = vrot.slane %v3226_v11, 9 }
 0x17c   : > { %v3851_v4 = vcombine.low %v3107_v26, %v3121_v0  ;;  %v3865_v31 = vcombine.low %v3251_v2, %v3255_v14  ;;  %v3258_v24 = vrot.slane %v4990_v17, 5  ;;  %v3861_v57 = vrot.slane %v3229_v38, 9 }
 0x17d   : > { %4163 = vmatprep.mubr.msk.bf16.mxu0 %vm2026_vm15, %v3850_v1  ;;  %v3270_v37 = vrot.slane %v5029_v12, 5  ;;  %v3263_v8 = vsel %vm4663_vm11, %v3859_v53, %v3262_v45  ;;  %v3267_v10 = vsel %vm4663_vm11, %v3860_v7, %v3266_v32  ;;  %v3863_v17 = vrot.slane %v3231_v9, 9 }
 0x17e   : > { %4164 = vmatmul.mubr.msk.bf16.gmra.mxu0 %vm2026_vm15, %v3851_v4  ;;  %v3259_v19 = vsel %vm4663_vm11, %v3858_v50, %v3258_v24  ;;  %v3862_v42 = vrot.slane %v3230_v25, 9  ;;  %v3274_v47 = vrot.slane %v5034_v35, 5  ;;  %v3278_v22 = vrot.slane %v4829_v56, 5 }
 0x17f   : > { %4179 = vmatprep.mubr.msk.bf16.mxu0 %vm320_vm1, %v4255_v27  ;;  %v3866_v58 = vcombine.low %v3259_v19, %v3263_v8  ;;  %v3271_v49 = vsel %vm4663_vm11, %v3861_v57, %v3270_v37 }
 0x180   : > { %4150 = vmatmul.mubr.msk.bf16.vlgmr.msra.gmra.mxu1 %vm2026_vm15, %v4252_v44  ;;  %v3867_v12 = vcombine.low %v3267_v10, %v3271_v49  ;;  %v3275_v13 = vsel %vm4663_vm11, %v3862_v42, %v3274_v47  ;;  %v3279_v39 = vsel %vm4663_vm11, %v3863_v17, %v3278_v22 }
 0x181   : > { %4168 = vmatpush3.bf16.msra.mxu1 %v3307_v29  ;;  %4153 = vmatprep.mubr.msk.bf16.mxu1 %vm2026_vm15, %v4253_v3  ;;  %v3868_v33 = vcombine.low %v3275_v13, %v3279_v39 }
 0x186   : > { %4180 = vmatmul.mubr.msk.bf16.vlgmr.msra.gmra.mxu0 %vm320_vm1, %v4256_v48 }
 0x187   : > { %4183 = vmatprep.mubr.msk.bf16.mxu0 %vm320_vm1, %v4257_v28 }
 0x188   : > { %4154 = vmatmul.mubr.msk.bf16.gmra.mxu1 %vm2026_vm15, %v4254_v40 }
 0x189   : > { %4169 = vmatprep.mubr.msk.bf16.mxu1 %vm2026_vm15, %v3865_v31 }
 0x18e   : > { %4184 = vmatmul.mubr.msk.bf16.gmra.mxu0 %vm320_vm1, %v4258_v36 }
 0x190   : > { %4170 = vmatmul.mubr.msk.bf16.vlgmr.msra.gmra.mxu1 %vm2026_vm15, %v3866_v58 }
 0x191   : > { %4173 = vmatprep.mubr.msk.bf16.mxu1 %vm2026_vm15, %v3867_v12 }
 0x198   : > { %4174 = vmatmul.mubr.msk.bf16.gmra.mxu1 %vm2026_vm15, %v3868_v33 }
 0x1f8   : > { %v4101_v23 = vpop.f32.mrf.mxu0 }
 0x1fa   : > { %v2177_v61 = vpop.f32.mrf.mxu0 }
 0x1fc   : > { %v4102_v59 = vpop.f32.mrf.mxu0 }
 0x1fe   : > { %v2180_v18 = vpop.f32.mrf.mxu0 }
 0x204   : > { %v5098_v35 = vpop.f32.mrf.mxu0  ;;  %v4091_v56 = vpop.f32.mrf.mxu1 }
 0x205   : > { %v2186_v10 = vadd.f32 %v4101_v23, %v4091_v56 }
 0x206   : > { %v5100_v20 = vpop.f32.mrf.mxu0  ;;  %v2077_v21 = vpop.f32.mrf.mxu1 }
 0x207   : > { %v2178_v58 = vadd.f32 %v2177_v61, %v2077_v21 }
 0x208   : > { %v5102_v55 = vpop.f32.mrf.mxu0  ;;  %v4092_v30 = vpop.f32.mrf.mxu1 }
 0x209   : > { %v2189_v42 = vadd.f32 %v4102_v59, %v4092_v30 }
 0x20a   : > { %v5104_v60 = vpop.f32.mrf.mxu0  ;;  %v2080_v41 = vpop.f32.mrf.mxu1 }
 0x20b   : > { %v2181_v39 = vadd.f32 %v2180_v18, %v2080_v41 }
 0x20c   : > { %v4121_v52 = vpop.f32.mrf.mxu0 }
 0x20d   : > { %v4095_v51 = vpop.f32.mrf.mxu1 }
 0x20e   : > { %v2448_v63 = vpop.f32.mrf.mxu0  ;;  %v2202_v61 = vadd.f32 %v5098_v35, %v4095_v51 }
 0x20f   : > { %v2093_v0 = vpop.f32.mrf.mxu1 }
 0x210   : > { %v4122_v15 = vpop.f32.mrf.mxu0  ;;  %v2194_v21 = vadd.f32 %v5100_v20, %v2093_v0 }
 0x211   : > { %v4096_v1 = vpop.f32.mrf.mxu1 }
 0x212   : > { %v5106_v26 = vpop.f32.mrf.mxu0 }
 0x213   : > { %v5108_v27 = vpop.f32.mrf.mxu1 }
 0x214   : > { %v5110_v4 = vpop.f32.mrf.mxu0 }
 0x215   : > { %v4111_v16 = vpop.f32.mrf.mxu1 }
 0x216   : > { %v5112_v44 = vpop.f32.mrf.mxu0  ;;  %v2363_v49 = vadd.f32 %v4111_v16, %v2186_v10 }
 0x217   : > { %v2330_v29 = vpop.f32.mrf.mxu1 }
 0x218   : > { %v5114_v3 = vpop.f32.mrf.mxu0  ;;  %v2361_v47 = vadd.f32 %v2330_v29, %v2178_v58  ;;  %v2205_v29 = vadd.f32 %v5102_v55, %v4096_v1 }
 0x219   : > { %v4112_v34 = vpop.f32.mrf.mxu1 }
 0x21a   : > { %v5116_v43 = vpop.f32.mrf.mxu0  ;;  %v2364_v33 = vadd.f32 %v4112_v34, %v2189_v42 }
 0x21b   : > { %v2333_v62 = vpop.f32.mrf.mxu1 }
 0x21c   : > { %v4141_v5 = vpop.f32.mrf.mxu0  ;;  %v2362_v23 = vadd.f32 %v2333_v62, %v2181_v39  ;;  %v2482_v30 = vadd.f32 %v4122_v15, %v2364_v33 }
 0x21d   : > { %v4115_v46 = vpop.f32.mrf.mxu1 }
 0x21e   : > { %v2836_v48 = vpop.f32.mrf.mxu0  ;;  %v2367_v58 = vadd.f32 %v4115_v46, %v2202_v61 }
 0x21f   : > { %v2346_v28 = vpop.f32.mrf.mxu1 }
 0x220   : > { %v5118_v2 = vpop.f32.mrf.mxu0  ;;  %v2365_v18 = vadd.f32 %v2346_v28, %v2194_v21  ;;  %v2485_v55 = vadd.f32 %v5110_v4, %v2367_v58 }
 0x221   : > { %v4116_v54 = vpop.f32.mrf.mxu1 }
 0x222   : > { %v5120_v6 = vpop.f32.mrf.mxu0  ;;  %v2368_v35 = vadd.f32 %v4116_v54, %v2205_v29  ;;  %v2483_v1 = vadd.f32 %v5112_v44, %v2365_v18 }
 0x223   : > { %v2349_v40 = vpop.f32.mrf.mxu1 }
 0x224   : > { %v5122_v14 = vpop.f32.mrf.mxu0 }
 0x225   : > { %v4131_v31 = vpop.f32.mrf.mxu1 }
 0x226   : > { %v5124_v11 = vpop.f32.mrf.mxu0 }
 0x227   : > { %v2678_v45 = vpop.f32.mrf.mxu1 }
 0x228   : > { %v5126_v53 = vpop.f32.mrf.mxu0 }
 0x229   : > { %5239 = vst [vmem:[#allocation4_spill] sm:$0xff] %v5126_v53  ;;  %v4132_v7 = vpop.f32.mrf.mxu1 }
 0x22a   : > { %v5128_v38 = vpop.f32.mrf.mxu0  ;;  %v2712_v34 = vadd.f32 %v4132_v7, %v2482_v30  ;;  %v2486_v7 = vadd.f32 %v5114_v3, %v2368_v35 }
 0x22b   : > { %5240 = vst [vmem:[#allocation3_spill] sm:$0xff] %v5128_v38  ;;  %v2681_v50 = vpop.f32.mrf.mxu1  ;;  %v2481_v38 = vadd.f32 %v4121_v52, %v2363_v49  ;;  %v2480_v49 = vadd.f32 %v5106_v26, %v2362_v23 }
 0x22d   : > { %v2711_v56 = vadd.f32 %v4131_v31, %v2481_v38  ;;  %v2710_v0 = vadd.f32 %v2681_v50, %v2480_v49  ;;  %v2870_v38 = vadd.f32 %v5118_v2, %v2712_v34  ;;  %v5164_v2 = vld [vmem:[%s5222_s4] ss:$0 sm:$0xff] }
 0x22f   : > { %v2869_v62 = vadd.f32 %v4141_v5, %v2711_v56  ;;  %v2868_v4 = vadd.f32 %v5120_v6, %v2710_v0 }
 0x230   : > { %v5244_v56 = vld [vmem:[#allocation4_spill] sm:$0xff] }
 0x232   : > { %v5246_v30 = vld [vmem:[#allocation3_spill] sm:$0xff] }
 0x233   : > { %v4161_v32 = vpop.f32.mrf.mxu0 }
 0x235   : > { %v5130_v24 = vpop.f32.mrf.mxu0 }
 0x237   : > { %v5132_v57 = vpop.f32.mrf.mxu0 }
 0x238   : > { %5241 = vst [vmem:[#allocation5_spill] sm:$0xff] %v5132_v57  ;;  %v4135_v37 = vpop.f32.mrf.mxu1  ;;  %v2479_v57 = vadd.f32 %v2448_v63, %v2361_v47  ;;  %v2197_v63 = vadd.f32 %v5104_v60, %v5108_v27  ;;  %v5157_v60 = vld [vmem:[%s5224_s6] ss:$0 sm:$0xff] }
 0x239   : > { %v5134_v8 = vpop.f32.mrf.mxu0  ;;  %v2715_v26 = vadd.f32 %v4135_v37, %v2485_v55 }
 0x23a   : > { %v2694_v36 = vpop.f32.mrf.mxu1  ;;  %5242 = vst [vmem:[#allocation6_spill] sm:$0xff] %v5134_v8  ;;  %v2709_v59 = vadd.f32 %v2678_v45, %v2479_v57  ;;  %v2366_v15 = vadd.f32 %v2349_v40, %v2197_v63 }
 0x23b   : > { %v2713_v5 = vadd.f32 %v2694_v36, %v2483_v1  ;;  %v2873_v6 = vadd.f32 %v5122_v14, %v2715_v26 }
 0x23c   : > { %v4136_v9 = vpop.f32.mrf.mxu1  ;;  %v2867_v45 = vadd.f32 %v2836_v48, %v2709_v59  ;;  %v2484_v50 = vadd.f32 %v5116_v43, %v2366_v15 }
 0x23d   : > { %v2716_v44 = vadd.f32 %v4136_v9, %v2486_v7 }
 0x23e   : > { %v2697_v25 = vpop.f32.mrf.mxu1  ;;  %v5136_v19 = vpop.f32.mrf.mxu0 }
 0x23f   : > { %v2874_v61 = vadd.f32 %v5244_v56, %v2716_v44 }
 0x240   : > { %v4151_v17 = vpop.f32.mrf.mxu1  ;;  %v5138_v12 = vpop.f32.mrf.mxu0 }
 0x241   : > { %v2988_v31 = vadd.f32 %v4151_v17, %v2869_v62 }
 0x242   : > { %v2955_v22 = vpop.f32.mrf.mxu1  ;;  %v5140_v13 = vpop.f32.mrf.mxu0 }
 0x243   : > { %v2986_v28 = vadd.f32 %v2955_v22, %v2867_v45  ;;  %v3218_v40 = vadd.f32 %v4161_v32, %v2988_v31  ;;  %v2871_v32 = vadd.f32 %v5124_v11, %v2713_v5  ;;  %v5243_v22 = vld [vmem:[#allocation5_spill] sm:$0xff]  ;;  %v5245_v11 = vld [vmem:[#allocation6_spill] sm:$0xff] }
 0x244   : > { %v4152_v53 = vpop.f32.mrf.mxu1  ;;  %v5142_v8 = vpop.f32.mrf.mxu0 }
 0x245   : > { %v2989_v54 = vadd.f32 %v4152_v53, %v2870_v38  ;;  %v3216_v17 = vadd.f32 %v5130_v24, %v2986_v28  ;;  %v2714_v53 = vadd.f32 %v2697_v25, %v2484_v50 }
 0x246   : > { %v2958_v16 = vpop.f32.mrf.mxu1  ;;  %v4181_v10 = vpop.f32.mrf.mxu0 }
 0x247   : > { %v2987_v3 = vadd.f32 %v2958_v16, %v2868_v4  ;;  %v3491_v37 = vadd.f32 %v4181_v10, %v5157_v60  ;;  %v3219_v39 = vadd.f32 %v5243_v22, %v2989_v54  ;;  %v2872_v29 = vadd.f32 %v5246_v30, %v2714_v53 }
 0x248   : > { %v4155_v41 = vpop.f32.mrf.mxu1  ;;  %v3482_v52 = vpop.f32.mrf.mxu0 }
 0x249   : > { %v2992_v33 = vadd.f32 %v4155_v41, %v2873_v6  ;;  %v3483_v21 = vadd.f32 %v5157_v60, %v3482_v52  ;;  %v3217_v10 = vadd.f32 %v5245_v11, %v2987_v3 }
 0x24a   : > { %v2971_v51 = vpop.f32.mrf.mxu1  ;;  %v4182_v20 = vpop.f32.mrf.mxu0 }
 0x24b   : > { %v2990_v23 = vadd.f32 %v2971_v51, %v2871_v32  ;;  %v3494_v58 = vadd.f32 %v4182_v20, %v5157_v60  ;;  %v3222_v51 = vadd.f32 %v5136_v19, %v2992_v33 }
 0x24c   : > { %v4156_v46 = vpop.f32.mrf.mxu1  ;;  %v3485_v48 = vpop.f32.mrf.mxu0 }
 0x24d   : > { %v2993_v59 = vadd.f32 %v4156_v46, %v2874_v61  ;;  %v3486_v35 = vadd.f32 %v5157_v60, %v3485_v48  ;;  %v3220_v20 = vadd.f32 %v5138_v12, %v2990_v23 }
 0x24e   : > { %v2974_v27 = vpop.f32.mrf.mxu1  ;;  %v4185_v43 = vpop.f32.mrf.mxu0 }
 0x24f   : > { %v2991_v63 = vadd.f32 %v2974_v27, %v2872_v29  ;;  %v3507_v1 = vadd.f32 %v4185_v43, %v5157_v60  ;;  %v3223_v26 = vadd.f32 %v5140_v13, %v2993_v59 }
 0x250   : > { %v4171_v57 = vpop.f32.mrf.mxu1  ;;  %v3498_v41 = vpop.f32.mrf.mxu0 }
 0x251   : > { %v3376_v36 = vadd.f32 %v4171_v57, %v3218_v40  ;;  %v3499_v27 = vadd.f32 %v5157_v60, %v3498_v41  ;;  %v3221_v4 = vadd.f32 %v5142_v8, %v2991_v63 }
 0x252   : > { %v3343_v9 = vpop.f32.mrf.mxu1  ;;  %v4186_v28 = vpop.f32.mrf.mxu0 }
 0x253   : > { %v3391_v42 = vadd.f32 %v5164_v2, %v3376_v36  ;;  %v3374_v47 = vadd.f32 %v3343_v9, %v3216_v17  ;;  %v3510_v3 = vadd.f32 %v4186_v28, %v5157_v60 }
 0x254   : > { %v4172_v16 = vpop.f32.mrf.mxu1 }
 0x255   : > { %v3515_v24 = vadd.f32 %v3491_v37, %v3391_v42  ;;  %v3389_v14 = vadd.f32 %v5164_v2, %v3374_v47  ;;  %v3377_v25 = vadd.f32 %v4172_v16, %v3219_v39  ;;  %v3501_v37 = vpop.f32.mrf.mxu0 }
 0x256   : > { %v3346_v18 = vpop.f32.mrf.mxu1  ;;  %v3502_v43 = vadd.f32 %v5157_v60, %v3501_v37 }
 0x257   : > { %v3523_v34 = vmax.f32 %v3515_v24, 0.0  ;;  %v3513_v49 = vadd.f32 %v3483_v21, %v3389_v14  ;;  %v3392_v62 = vadd.f32 %v5164_v2, %v3377_v25  ;;  %v3375_v52 = vadd.f32 %v3346_v18, %v3217_v10 }
 0x258   : > { %v4175_v0 = vpop.f32.mrf.mxu1 }
 0x259   : > { %v3531_v31 = vpack.c.bf16 %v3523_v34, %v3523_v34  ;;  %v3521_v45 = vmax.f32 %v3513_v49, 0.0  ;;  %v3516_v15 = vadd.f32 %v3494_v58, %v3392_v62  ;;  %v3390_v55 = vadd.f32 %v5164_v2, %v3375_v52 }
 0x25a   : > { %v3380_v46 = vadd.f32 %v4175_v0, %v3222_v51  ;;  %v3359_v38 = vpop.f32.mrf.mxu1 }
 0x25b   : > { %3539 = vst.msk [vmem:[%s5183_s11 + $0x8] sm:$0xf] %vm1694_vm5, %v3531_v31  ;;  %v3529_v5 = vpack.c.bf16 %v3521_v45, %v3521_v45  ;;  %v3524_v19 = vmax.f32 %v3516_v15, 0.0  ;;  %v3514_v7 = vadd.f32 %v3486_v35, %v3390_v55  ;;  %v3378_v12 = vadd.f32 %v3359_v38, %v3220_v20 }
 0x25c   : > { %v3395_v48 = vadd.f32 %v5164_v2, %v3380_v46  ;;  %v4176_v54 = vpop.f32.mrf.mxu1 }
 0x25d   : > { %3537 = vst.msk [vmem:[%s5183_s11] sm:$0xf] %vm1694_vm5, %v3529_v5  ;;  %v3532_v40 = vpack.c.bf16 %v3524_v19, %v3524_v19  ;;  %v3522_v44 = vmax.f32 %v3514_v7, 0.0  ;;  %v3393_v13 = vadd.f32 %v5164_v2, %v3378_v12  ;;  %v3381_v50 = vadd.f32 %v4176_v54, %v3223_v26 }
 0x25e   : > { %v3519_v57 = vadd.f32 %v3507_v1, %v3395_v48  ;;  %v3362_v36 = vpop.f32.mrf.mxu1 }
 0x25f   : > { %3540 = vst.msk [vmem:[%s5183_s11 + $0xc] sm:$0xf] %vm1694_vm5, %v3532_v40  ;;  %v3530_v17 = vpack.c.bf16 %v3522_v44, %v3522_v44  ;;  %v3517_v53 = vadd.f32 %v3499_v27, %v3393_v13  ;;  %v3396_v8 = vadd.f32 %v5164_v2, %v3381_v50  ;;  %v3379_v6 = vadd.f32 %v3362_v36, %v3221_v4 }
 0x260   : > { %v3527_v32 = vmax.f32 %v3519_v57, 0.0 }
 0x261   : > { %3538 = vst.msk [vmem:[%s5183_s11 + $0x4] sm:$0xf] %vm1694_vm5, %v3530_v17  ;;  %v3525_v9 = vmax.f32 %v3517_v53, 0.0  ;;  %v3520_v42 = vadd.f32 %v3510_v3, %v3396_v8  ;;  %v3394_v47 = vadd.f32 %v5164_v2, %v3379_v6 }
 0x262   : > { %v3535_v22 = vpack.c.bf16 %v3527_v32, %v3527_v32 }
 0x263   : > { %v3533_v39 = vpack.c.bf16 %v3525_v9, %v3525_v9  ;;  %v3528_v33 = vmax.f32 %v3520_v42, 0.0  ;;  %v3518_v23 = vadd.f32 %v3502_v43, %v3394_v47 }
 0x264   : > { %3543 = vst.msk [vmem:[%s5183_s11 + $0x18] sm:$0xf] %vm1694_vm5, %v3535_v22 }
 0x265   : > { %3541 = vst.msk [vmem:[%s5183_s11 + $0x10] sm:$0xf] %vm1694_vm5, %v3533_v39  ;;  %v3536_v56 = vpack.c.bf16 %v3528_v33, %v3528_v33  ;;  %v3526_v61 = vmax.f32 %v3518_v23, 0.0 }
 0x267   : > { %3544 = vst.msk [vmem:[%s5183_s11 + $0x1c] sm:$0xf] %vm1694_vm5, %v3536_v56  ;;  %v3534_v21 = vpack.c.bf16 %v3526_v61, %v3526_v61 }
 0x269   : > { %3542 = vst.msk [vmem:[%s5183_s11 + $0x14] sm:$0xf] %vm1694_vm5, %v3534_v21 }
 0x26a PF: > { %s17_s24 = sadd.s32 1, %s4265_s24  }
 0x26b   : > { %p14_p4 = scmp.ge.s32.totalorder %s17_s24, 4  }
 0x26d   :  { %16 = sbr.rel (!%p14_p4) target bundleno = 1 (0x1), region = 101 }

</bundles_post_ra>
